<compile_context>
chip_gen: v6e
topology: v6e:2x2x1
jax: 0.10.0
libtpu: 0.0.40
codegen_flags: <defaults>
</compile_context>

<pallas_src>
import functools

import jax
import jax.numpy as jnp
import numpy as np
from jax import lax
from jax.experimental import pallas as pl
from jax.experimental.pallas import tpu as pltpu

LANES = 128
CIN_PAD = 16                 # conv2 input channels padded 10 -> 16 (one sublane group)
MXU_DTYPE = jnp.bfloat16     # MXU operand dtype; set jnp.float32 for ~1e-6 agreement


# ------------------------------ fused kernel --------------------------------

def _fused_net_kernel(a1_ref, w1_ref, b1_ref, w2_ref, b2_ref, w3_ref, b3_ref,
                      w4_ref, b4_ref, o_ref, h1cat_ref, x3_ref, *, batch):
    f32 = jnp.float32
    B = batch
    R = 36 * B               # rows per pooled block: (i, j, n) with i, j in 0..5
    G = 4 * R                # rows per conv1 pool-window offset (dh, dw)

    # ---- conv1: 4 GEMMs (one per (dh,dw) pool offset), streaming 2x2 pool max ----
    h = jnp.dot(a1_ref[0:G, :], w1_ref[...], preferred_element_type=f32)
    for d in range(1, 4):
        h = jnp.maximum(h, jnp.dot(a1_ref[d * G:(d + 1) * G, :], w1_ref[...],
                                   preferred_element_type=f32))
    # max_d(z_d) + b == max_d(z_d + b): bias added once, after the pool max.
    h1 = jnp.maximum(h + b1_ref[...], 0.0)        # (4R, 128), rows = (ph, pw, i, j, n)

    # Pack the four (ph,pw) parity blocks side-by-side along lanes -> conv2 LHS.
    for blk in range(4):
        h1cat_ref[0:R, blk * CIN_PAD:(blk + 1) * CIN_PAD] = \
            h1[blk * R:(blk + 1) * R, 0:CIN_PAD]
    # Rows R .. R+14B-1 of h1cat are intentionally left unwritten: they only feed
    # conv2 output rows with pooled coords a or b in {4, 5}, which fc1 never reads.

    # ---- conv2 + 2x2 pool: 9 shift-group GEMMs, register accumulation ------------
    # Output lanes pack the 4 pool positions (eh,ew) in 32-lane groups (20 used).
    acc = None
    for qh in range(3):
        for qw in range(3):
            shift = (qh * 6 + qw) * B
            lhs = h1cat_ref[shift:shift + R, :].astype(MXU_DTYPE)
            z = jnp.dot(lhs, w2_ref[qh * 3 + qw], preferred_element_type=f32)
            acc = z if acc is None else acc + z
    m = jnp.maximum(jnp.maximum(acc[:, 0:32], acc[:, 32:64]),
                    jnp.maximum(acc[:, 64:96], acc[:, 96:128]))
    h2 = jnp.maximum(m + b2_ref[...], 0.0)        # (R, 32): row = (a*6+b)*B + n
    # TODO(synk): nn.Dropout2d / F.dropout are identity (eval-mode forward only).

    # ---- fc1 as ONE K=320 GEMM (torch .view(-1,320) order folded into w3) --------
    for p in range(16):
        pos = (p // 4) * 6 + (p % 4)              # row block (a*6+b) of h2, p = a*4+b
        x3_ref[:, p * 20:(p + 1) * 20] = h2[pos * B:(pos + 1) * B, 0:20]
    x320 = x3_ref[...].astype(MXU_DTYPE)          # (B, 320)
    h3 = jnp.maximum(jnp.dot(x320, w3_ref[...], preferred_element_type=f32)
                     + b3_ref[...], 0.0)          # (B, 128), lanes >= 50 are exactly 0

    # ---- fc2 + log_softmax (padded logit lanes masked before the reductions) -----
    logits = jnp.dot(h3[:, 0:64].astype(MXU_DTYPE), w4_ref[...],
                     preferred_element_type=f32) + b4_ref[...]
    lane = lax.broadcasted_iota(jnp.int32, logits.shape, 1)
    masked = jnp.where(lane < 10, logits, -jnp.inf)
    mx = jnp.max(masked, axis=-1, keepdims=True)
    sh = masked - mx
    lse = jnp.log(jnp.sum(jnp.exp(sh), axis=-1, keepdims=True))
    o_ref[...] = sh - lse                         # lane-dense (B,128); host trims to 10


# ------------------------- host-side (one-time) prep -------------------------

def prepare_params(params):
    """One-time repack with minimal zero-padding (only the K/sublane dims)."""
    f32 = np.float32
    conv1_w = np.asarray(params["conv1_w"], f32)   # (10, 1, 5, 5)
    conv1_b = np.asarray(params["conv1_b"], f32)
    conv2_w = np.asarray(params["conv2_w"], f32)   # (20, 10, 5, 5)
    conv2_b = np.asarray(params["conv2_b"], f32)
    fc1_w = np.asarray(params["fc1_w"], f32)       # (50, 320)
    fc1_b = np.asarray(params["fc1_b"], f32)
    fc2_w = np.asarray(params["fc2_w"], f32)       # (10, 50)
    fc2_b = np.asarray(params["fc2_b"], f32)

    # conv1: (K = 25 -> 32, OC = 10 -> 128)
    w1 = np.zeros((32, LANES), f32)
    w1[:25, :10] = conv1_w.reshape(10, 25).T
    b1 = np.zeros((1, LANES), f32); b1[0, :10] = conv1_b

    # conv2: 9 shift-group slabs indexed (qh, qw).
    #   rows = (ph,pw)-parity-block * 16 + cin,  cols = pool-position (eh,ew) * 32 + cout
    #   tap (kh, kw) = (2*qh + ph - eh, 2*qw + pw - ew), zero if out of the 5x5 window.
    w2 = np.zeros((9, 4 * CIN_PAD, LANES), f32)
    for qh in range(3):
        for qw in range(3):
            for ph in range(2):
                for pw in range(2):
                    for eh in range(2):
                        for ew in range(2):
                            kh, kw = 2 * qh + ph - eh, 2 * qw + pw - ew
                            if 0 <= kh < 5 and 0 <= kw < 5:
                                r0 = (ph * 2 + pw) * CIN_PAD
                                c0 = (eh * 2 + ew) * 32
                                w2[qh * 3 + qw, r0:r0 + 10, c0:c0 + 20] = \
                                    conv2_w[:, :, kh, kw].T
    b2 = np.zeros((1, 32), f32); b2[0, :20] = conv2_b

    # fc1: single (320, 128) slab; row p*20 + c multiplies pooled position p=a*4+b, chan c.
    w3 = np.zeros((320, LANES), f32)
    fr = fc1_w.reshape(50, 20, 4, 4)               # [f, c, a, b] (torch .view order)
    for p in range(16):
        a, b = p // 4, p % 4
        w3[p * 20:(p + 1) * 20, :50] = fr[:, :, a, b].T
    b3 = np.zeros((1, LANES), f32); b3[0, :50] = fc1_b

    # fc2: (K = 50 -> 64, 10 -> 128)
    w4 = np.zeros((64, LANES), f32)
    w4[:50, :10] = fc2_w.T
    b4 = np.zeros((1, LANES), f32); b4[0, :10] = fc2_b

    mx = lambda a: jnp.asarray(a, dtype=MXU_DTYPE)
    fp = lambda a: jnp.asarray(a, dtype=jnp.float32)
    return {"w1": mx(w1), "b1": fp(b1), "w2": mx(w2), "b2": fp(b2),
            "w3": mx(w3), "b3": fp(b3), "w4": mx(w4), "b4": fp(b4)}


def _build_conv1_patches(x):
    """x: (N,1,28,28) NCHW -> (16*36*N, 32) bf16 conv1 im2col matrix whose rows are
    ordered (dh, dw, ph, pw, i, j, n) with oh = 4*i + 2*ph + dh, ow = 4*j + 2*pw + dw."""
    n = x.shape[0]
    x_nhwc = x.reshape(n, 28, 28, 1)                          # C == 1: free reshape
    p = lax.conv_general_dilated_patches(
        x_nhwc, filter_shape=(5, 5), window_strides=(1, 1), padding="VALID",
        dimension_numbers=("NHWC", "HWIO", "NHWC"))           # (N, 24, 24, 25)
    p = p.reshape(n, 6, 2, 2, 6, 2, 2, 25)                    # (n, i, ph, dh, j, pw, dw, k)
    p = p.transpose(3, 6, 2, 5, 1, 4, 0, 7)                   # (dh, dw, ph, pw, i, j, n, k)
    p = p.reshape(16 * 36 * n, 25)
    p = jnp.pad(p, ((0, 0), (0, 7)))                          # K: 25 -> 32 only
    return p.astype(MXU_DTYPE)


def _full_block(shape):
    nd = len(shape)
    return pl.BlockSpec(shape, lambda i, _nd=nd: (0,) * _nd)


def net_forward(prepared, x):
    n = x.shape[0]
    a1 = _build_conv1_patches(x)
    operands = (a1, prepared["w1"], prepared["b1"], prepared["w2"], prepared["b2"],
                prepared["w3"], prepared["b3"], prepared["w4"], prepared["b4"])
    out = pl.pallas_call(
        functools.partial(_fused_net_kernel, batch=n),
        out_shape=jax.ShapeDtypeStruct((n, LANES), jnp.float32),
        grid=(1,),
        in_specs=[_full_block(op.shape) for op in operands],
        out_specs=_full_block((n, LANES)),
        scratch_shapes=[
            pltpu.VMEM((50 * n, 4 * CIN_PAD), jnp.float32),   # lane-packed pooled conv1 map
            pltpu.VMEM((n, 320), jnp.float32),                # fc1 LHS (torch flatten order)
        ],
        compiler_params=pltpu.CompilerParams(dimension_semantics=("arbitrary",)),
    )(*operands)
    return out[:, :10]        # kernel writes a lane-dense (n,128) block; trim host-side


# --------------------------- pure-JAX reference ------------------------------

def reference_forward(params, x):
    dn = ("NCHW", "OIHW", "NCHW")
    y = lax.conv_general_dilated(x, params["conv1_w"], (1, 1), "VALID",
                                 dimension_numbers=dn)
    y = y + params["conv1_b"][None, :, None, None]
    y = jax.nn.relu(lax.reduce_window(y, -jnp.inf, lax.max,
                                      (1, 1, 2, 2), (1, 1, 2, 2), "VALID"))
    y = lax.conv_general_dilated(y, params["conv2_w"], (1, 1), "VALID",
                                 dimension_numbers=dn)
    y = y + params["conv2_b"][None, :, None, None]
    y = jax.nn.relu(lax.reduce_window(y, -jnp.inf, lax.max,
                                      (1, 1, 2, 2), (1, 1, 2, 2), "VALID"))
    y = y.reshape(y.shape[0], 320)
    y = jax.nn.relu(y @ params["fc1_w"].T + params["fc1_b"])
    y = y @ params["fc2_w"].T + params["fc2_b"]
    return jax.nn.log_softmax(y, axis=-1)


# ----------------------------------- main ------------------------------------

def init_params(key):
    """Deterministic init with PyTorch-default uniform(-1/sqrt(fan_in), +)."""
    ks = jax.random.split(key, 8)

    def u(k, shape, fan_in):
        bound = 1.0 / jnp.sqrt(fan_in)
        return jax.random.uniform(k, shape, jnp.float32, -bound, bound)

    return {
        "conv1_w": u(ks[0], (10, 1, 5, 5), 1 * 5 * 5),
        "conv1_b": u(ks[1], (10,), 1 * 5 * 5),
        "conv2_w": u(ks[2], (20, 10, 5, 5), 10 * 5 * 5),
        "conv2_b": u(ks[3], (20,), 10 * 5 * 5),
        "fc1_w":   u(ks[4], (50, 320), 320),
        "fc1_b":   u(ks[5], (50,), 320),
        "fc2_w":   u(ks[6], (10, 50), 50),
        "fc2_b":   u(ks[7], (10,), 50),
    }


if __name__ == "__main__":
    key = jax.random.PRNGKey(0)
    kp, kx = jax.random.split(key)
    params = init_params(kp)
    # MNIST-shaped input: the .view(-1, 320) in the module implies 1x28x28 inputs.
    x = jax.random.normal(kx, (2, 1, 28, 28), dtype=jnp.float32)

    prepared = prepare_params(params)      # one-time repack (minimal padding, pre-transposed)
    fwd = jax.jit(net_forward)

    out = jax.block_until_ready(fwd(prepared, x))
    ref = jax.block_until_ready(reference_forward(params, x))

    assert out.shape == (2, 10)
    # bf16 MXU operands (f32 accumulation/epilogue) vs f32 reference -> bf16-level tolerance.
    assert jnp.allclose(out, ref, rtol=5e-2, atol=5e-2), "mismatch vs JAX reference"
    print("KERNEL_OK")
</pallas_src>

<mosaic_0001>
module attributes {stable_mosaic.version = 11 : i64} {
  func.func @_fused_net_kernel(%arg0: i32, %arg1: memref<1152x32xbf16, #tpu.memory_space<vmem>>, %arg2: memref<32x128xbf16, #tpu.memory_space<vmem>>, %arg3: memref<1x128xf32, #tpu.memory_space<vmem>>, %arg4: memref<9x64x128xbf16, #tpu.memory_space<vmem>>, %arg5: memref<1x32xf32, #tpu.memory_space<vmem>>, %arg6: memref<320x128xbf16, #tpu.memory_space<vmem>>, %arg7: memref<1x128xf32, #tpu.memory_space<vmem>>, %arg8: memref<64x128xbf16, #tpu.memory_space<vmem>>, %arg9: memref<1x128xf32, #tpu.memory_space<vmem>>, %arg10: memref<2x128xf32, #tpu.memory_space<vmem>>, %arg11: memref<100x64xf32, #tpu.memory_space<vmem>>, %arg12: memref<2x320xf32, #tpu.memory_space<vmem>>) attributes {dimension_semantics = [#tpu.dimension_semantics<arbitrary>], iteration_bounds = array<i64: 1>, scalar_prefetch = 0 : i64, scratch_operands = 2 : i64, tpu.core_type = #tpu.core_type<tc>, window_params = [{pipeline_mode = #tpu.pipeline_mode<synchronous>, transform_indices = @transform_0, window_bounds = array<i64: 1152, 32>}, {pipeline_mode = #tpu.pipeline_mode<synchronous>, transform_indices = @transform_1, window_bounds = array<i64: 32, 128>}, {pipeline_mode = #tpu.pipeline_mode<synchronous>, transform_indices = @transform_2, window_bounds = array<i64: 1, 128>}, {pipeline_mode = #tpu.pipeline_mode<synchronous>, transform_indices = @transform_3, window_bounds = array<i64: 9, 64, 128>}, {pipeline_mode = #tpu.pipeline_mode<synchronous>, transform_indices = @transform_4, window_bounds = array<i64: 1, 32>}, {pipeline_mode = #tpu.pipeline_mode<synchronous>, transform_indices = @transform_5, window_bounds = array<i64: 320, 128>}, {pipeline_mode = #tpu.pipeline_mode<synchronous>, transform_indices = @transform_6, window_bounds = array<i64: 1, 128>}, {pipeline_mode = #tpu.pipeline_mode<synchronous>, transform_indices = @transform_7, window_bounds = array<i64: 64, 128>}, {pipeline_mode = #tpu.pipeline_mode<synchronous>, transform_indices = @transform_8, window_bounds = array<i64: 1, 128>}, {pipeline_mode = #tpu.pipeline_mode<synchronous>, transform_indices = @transform_9, window_bounds = array<i64: 2, 128>}]} {
    %c0 = arith.constant 0 : index
    %c0_0 = arith.constant 0 : index
    %0 = vector.load %arg1[%c0, %c0_0] : memref<1152x32xbf16, #tpu.memory_space<vmem>>, vector<288x32xbf16>
    %c0_1 = arith.constant 0 : index
    %c0_2 = arith.constant 0 : index
    %1 = vector.load %arg2[%c0_1, %c0_2] : memref<32x128xbf16, #tpu.memory_space<vmem>>, vector<32x128xbf16>
    %cst = arith.constant dense<0.000000e+00> : vector<288x128xf32>
    %2 = tpu.matmul %0, %1, %cst {dimension_numbers = #tpu.dot_dimension_numbers<[1], [0], [0], [1], [0, 0, 1, 1], [], []>} : vector<288x32xbf16>, vector<32x128xbf16>, vector<288x128xf32> -> vector<288x128xf32>
    %c288 = arith.constant 288 : index
    %c0_3 = arith.constant 0 : index
    %3 = vector.load %arg1[%c288, %c0_3] : memref<1152x32xbf16, #tpu.memory_space<vmem>>, vector<288x32xbf16>
    %c0_4 = arith.constant 0 : index
    %c0_5 = arith.constant 0 : index
    %4 = vector.load %arg2[%c0_4, %c0_5] : memref<32x128xbf16, #tpu.memory_space<vmem>>, vector<32x128xbf16>
    %cst_6 = arith.constant dense<0.000000e+00> : vector<288x128xf32>
    %5 = tpu.matmul %3, %4, %cst_6 {dimension_numbers = #tpu.dot_dimension_numbers<[1], [0], [0], [1], [0, 0, 1, 1], [], []>} : vector<288x32xbf16>, vector<32x128xbf16>, vector<288x128xf32> -> vector<288x128xf32>
    %6 = arith.maximumf %2, %5 : vector<288x128xf32>
    %c576 = arith.constant 576 : index
    %c0_7 = arith.constant 0 : index
    %7 = vector.load %arg1[%c576, %c0_7] : memref<1152x32xbf16, #tpu.memory_space<vmem>>, vector<288x32xbf16>
    %c0_8 = arith.constant 0 : index
    %c0_9 = arith.constant 0 : index
    %8 = vector.load %arg2[%c0_8, %c0_9] : memref<32x128xbf16, #tpu.memory_space<vmem>>, vector<32x128xbf16>
    %cst_10 = arith.constant dense<0.000000e+00> : vector<288x128xf32>
    %9 = tpu.matmul %7, %8, %cst_10 {dimension_numbers = #tpu.dot_dimension_numbers<[1], [0], [0], [1], [0, 0, 1, 1], [], []>} : vector<288x32xbf16>, vector<32x128xbf16>, vector<288x128xf32> -> vector<288x128xf32>
    %10 = arith.maximumf %6, %9 : vector<288x128xf32>
    %c864 = arith.constant 864 : index
    %c0_11 = arith.constant 0 : index
    %11 = vector.load %arg1[%c864, %c0_11] : memref<1152x32xbf16, #tpu.memory_space<vmem>>, vector<288x32xbf16>
    %c0_12 = arith.constant 0 : index
    %c0_13 = arith.constant 0 : index
    %12 = vector.load %arg2[%c0_12, %c0_13] : memref<32x128xbf16, #tpu.memory_space<vmem>>, vector<32x128xbf16>
    %cst_14 = arith.constant dense<0.000000e+00> : vector<288x128xf32>
    %13 = tpu.matmul %11, %12, %cst_14 {dimension_numbers = #tpu.dot_dimension_numbers<[1], [0], [0], [1], [0, 0, 1, 1], [], []>} : vector<288x32xbf16>, vector<32x128xbf16>, vector<288x128xf32> -> vector<288x128xf32>
    %14 = arith.maximumf %10, %13 : vector<288x128xf32>
    %c0_15 = arith.constant 0 : index
    %c0_16 = arith.constant 0 : index
    %15 = vector.load %arg3[%c0_15, %c0_16] : memref<1x128xf32, #tpu.memory_space<vmem>>, vector<1x128xf32>
    %16 = vector.broadcast %15 : vector<1x128xf32> to vector<288x128xf32>
    %17 = arith.addf %14, %16 : vector<288x128xf32>
    %cst_17 = arith.constant 0.000000e+00 : f32
    %18 = vector.broadcast %cst_17 : f32 to vector<288x128xf32>
    %19 = arith.maximumf %17, %18 : vector<288x128xf32>
    %20 = vector.extract_strided_slice %19 {offsets = [0, 0], sizes = [72, 16], strides = [1, 1]} : vector<288x128xf32> to vector<72x16xf32>
    %c0_18 = arith.constant 0 : index
    %c0_19 = arith.constant 0 : index
    %21 = vector.load %arg11[%c0_18, %c0_19] : memref<100x64xf32, #tpu.memory_space<vmem>>, vector<72x16xf32>
    tpu.vector_store %arg11[%c0_18, %c0_19], %20 {strides = array<i32>} : memref<100x64xf32, #tpu.memory_space<vmem>>, vector<72x16xf32>,
    %22 = vector.extract_strided_slice %19 {offsets = [72, 0], sizes = [72, 16], strides = [1, 1]} : vector<288x128xf32> to vector<72x16xf32>
    %c0_20 = arith.constant 0 : index
    %c16 = arith.constant 16 : index
    %23 = vector.load %arg11[%c0_20, %c16] : memref<100x64xf32, #tpu.memory_space<vmem>>, vector<72x16xf32>
    tpu.vector_store %arg11[%c0_20, %c16], %22 {strides = array<i32>} : memref<100x64xf32, #tpu.memory_space<vmem>>, vector<72x16xf32>,
    %24 = vector.extract_strided_slice %19 {offsets = [144, 0], sizes = [72, 16], strides = [1, 1]} : vector<288x128xf32> to vector<72x16xf32>
    %c0_21 = arith.constant 0 : index
    %c32 = arith.constant 32 : index
    %25 = vector.load %arg11[%c0_21, %c32] : memref<100x64xf32, #tpu.memory_space<vmem>>, vector<72x16xf32>
    tpu.vector_store %arg11[%c0_21, %c32], %24 {strides = array<i32>} : memref<100x64xf32, #tpu.memory_space<vmem>>, vector<72x16xf32>,
    %26 = vector.extract_strided_slice %19 {offsets = [216, 0], sizes = [72, 16], strides = [1, 1]} : vector<288x128xf32> to vector<72x16xf32>
    %c0_22 = arith.constant 0 : index
    %c48 = arith.constant 48 : index
    %27 = vector.load %arg11[%c0_22, %c48] : memref<100x64xf32, #tpu.memory_space<vmem>>, vector<72x16xf32>
    tpu.vector_store %arg11[%c0_22, %c48], %26 {strides = array<i32>} : memref<100x64xf32, #tpu.memory_space<vmem>>, vector<72x16xf32>,
    %c0_23 = arith.constant 0 : index
    %c0_24 = arith.constant 0 : index
    %28 = vector.load %arg11[%c0_23, %c0_24] : memref<100x64xf32, #tpu.memory_space<vmem>>, vector<72x64xf32>
    %29 = arith.truncf %28 : vector<72x64xf32> to vector<72x64xbf16>
    %c0_25 = arith.constant 0 : index
    %c0_26 = arith.constant 0 : index
    %c0_27 = arith.constant 0 : index
    %30 = vector.load %arg4[%c0_25, %c0_26, %c0_27] : memref<9x64x128xbf16, #tpu.memory_space<vmem>>, vector<1x64x128xbf16>
    %31 = vector.shape_cast %30 : vector<1x64x128xbf16> to vector<64x128xbf16>
    %cst_28 = arith.constant dense<0.000000e+00> : vector<72x128xf32>
    %32 = tpu.matmul %29, %31, %cst_28 {dimension_numbers = #tpu.dot_dimension_numbers<[1], [0], [0], [1], [0, 0, 1, 1], [], []>} : vector<72x64xbf16>, vector<64x128xbf16>, vector<72x128xf32> -> vector<72x128xf32>
    %c2 = arith.constant 2 : index
    %c0_29 = arith.constant 0 : index
    %33 = vector.load %arg11[%c2, %c0_29] : memref<100x64xf32, #tpu.memory_space<vmem>>, vector<72x64xf32>
    %34 = arith.truncf %33 : vector<72x64xf32> to vector<72x64xbf16>
    %c1 = arith.constant 1 : index
    %c0_30 = arith.constant 0 : index
    %c0_31 = arith.constant 0 : index
    %35 = vector.load %arg4[%c1, %c0_30, %c0_31] : memref<9x64x128xbf16, #tpu.memory_space<vmem>>, vector<1x64x128xbf16>
    %36 = vector.shape_cast %35 : vector<1x64x128xbf16> to vector<64x128xbf16>
    %cst_32 = arith.constant dense<0.000000e+00> : vector<72x128xf32>
    %37 = tpu.matmul %34, %36, %cst_32 {dimension_numbers = #tpu.dot_dimension_numbers<[1], [0], [0], [1], [0, 0, 1, 1], [], []>} : vector<72x64xbf16>, vector<64x128xbf16>, vector<72x128xf32> -> vector<72x128xf32>
    %38 = arith.addf %32, %37 : vector<72x128xf32>
    %c4 = arith.constant 4 : index
    %c0_33 = arith.constant 0 : index
    %39 = vector.load %arg11[%c4, %c0_33] : memref<100x64xf32, #tpu.memory_space<vmem>>, vector<72x64xf32>
    %40 = arith.truncf %39 : vector<72x64xf32> to vector<72x64xbf16>
    %c2_34 = arith.constant 2 : index
    %c0_35 = arith.constant 0 : index
    %c0_36 = arith.constant 0 : index
    %41 = vector.load %arg4[%c2_34, %c0_35, %c0_36] : memref<9x64x128xbf16, #tpu.memory_space<vmem>>, vector<1x64x128xbf16>
    %42 = vector.shape_cast %41 : vector<1x64x128xbf16> to vector<64x128xbf16>
    %cst_37 = arith.constant dense<0.000000e+00> : vector<72x128xf32>
    %43 = tpu.matmul %40, %42, %cst_37 {dimension_numbers = #tpu.dot_dimension_numbers<[1], [0], [0], [1], [0, 0, 1, 1], [], []>} : vector<72x64xbf16>, vector<64x128xbf16>, vector<72x128xf32> -> vector<72x128xf32>
    %44 = arith.addf %38, %43 : vector<72x128xf32>
    %c12 = arith.constant 12 : index
    %c0_38 = arith.constant 0 : index
    %45 = vector.load %arg11[%c12, %c0_38] : memref<100x64xf32, #tpu.memory_space<vmem>>, vector<72x64xf32>
    %46 = arith.truncf %45 : vector<72x64xf32> to vector<72x64xbf16>
    %c3 = arith.constant 3 : index
    %c0_39 = arith.constant 0 : index
    %c0_40 = arith.constant 0 : index
    %47 = vector.load %arg4[%c3, %c0_39, %c0_40] : memref<9x64x128xbf16, #tpu.memory_space<vmem>>, vector<1x64x128xbf16>
    %48 = vector.shape_cast %47 : vector<1x64x128xbf16> to vector<64x128xbf16>
    %cst_41 = arith.constant dense<0.000000e+00> : vector<72x128xf32>
    %49 = tpu.matmul %46, %48, %cst_41 {dimension_numbers = #tpu.dot_dimension_numbers<[1], [0], [0], [1], [0, 0, 1, 1], [], []>} : vector<72x64xbf16>, vector<64x128xbf16>, vector<72x128xf32> -> vector<72x128xf32>
    %50 = arith.addf %44, %49 : vector<72x128xf32>
    %c14 = arith.constant 14 : index
    %c0_42 = arith.constant 0 : index
    %51 = vector.load %arg11[%c14, %c0_42] : memref<100x64xf32, #tpu.memory_space<vmem>>, vector<72x64xf32>
    %52 = arith.truncf %51 : vector<72x64xf32> to vector<72x64xbf16>
    %c4_43 = arith.constant 4 : index
    %c0_44 = arith.constant 0 : index
    %c0_45 = arith.constant 0 : index
    %53 = vector.load %arg4[%c4_43, %c0_44, %c0_45] : memref<9x64x128xbf16, #tpu.memory_space<vmem>>, vector<1x64x128xbf16>
    %54 = vector.shape_cast %53 : vector<1x64x128xbf16> to vector<64x128xbf16>
    %cst_46 = arith.constant dense<0.000000e+00> : vector<72x128xf32>
    %55 = tpu.matmul %52, %54, %cst_46 {dimension_numbers = #tpu.dot_dimension_numbers<[1], [0], [0], [1], [0, 0, 1, 1], [], []>} : vector<72x64xbf16>, vector<64x128xbf16>, vector<72x128xf32> -> vector<72x128xf32>
    %56 = arith.addf %50, %55 : vector<72x128xf32>
    %c16_47 = arith.constant 16 : index
    %c0_48 = arith.constant 0 : index
    %57 = vector.load %arg11[%c16_47, %c0_48] : memref<100x64xf32, #tpu.memory_space<vmem>>, vector<72x64xf32>
    %58 = arith.truncf %57 : vector<72x64xf32> to vector<72x64xbf16>
    %c5 = arith.constant 5 : index
    %c0_49 = arith.constant 0 : index
    %c0_50 = arith.constant 0 : index
    %59 = vector.load %arg4[%c5, %c0_49, %c0_50] : memref<9x64x128xbf16, #tpu.memory_space<vmem>>, vector<1x64x128xbf16>
    %60 = vector.shape_cast %59 : vector<1x64x128xbf16> to vector<64x128xbf16>
    %cst_51 = arith.constant dense<0.000000e+00> : vector<72x128xf32>
    %61 = tpu.matmul %58, %60, %cst_51 {dimension_numbers = #tpu.dot_dimension_numbers<[1], [0], [0], [1], [0, 0, 1, 1], [], []>} : vector<72x64xbf16>, vector<64x128xbf16>, vector<72x128xf32> -> vector<72x128xf32>
    %62 = arith.addf %56, %61 : vector<72x128xf32>
    %c24 = arith.constant 24 : index
    %c0_52 = arith.constant 0 : index
    %63 = vector.load %arg11[%c24, %c0_52] : memref<100x64xf32, #tpu.memory_space<vmem>>, vector<72x64xf32>
    %64 = arith.truncf %63 : vector<72x64xf32> to vector<72x64xbf16>
    %c6 = arith.constant 6 : index
    %c0_53 = arith.constant 0 : index
    %c0_54 = arith.constant 0 : index
    %65 = vector.load %arg4[%c6, %c0_53, %c0_54] : memref<9x64x128xbf16, #tpu.memory_space<vmem>>, vector<1x64x128xbf16>
    %66 = vector.shape_cast %65 : vector<1x64x128xbf16> to vector<64x128xbf16>
    %cst_55 = arith.constant dense<0.000000e+00> : vector<72x128xf32>
    %67 = tpu.matmul %64, %66, %cst_55 {dimension_numbers = #tpu.dot_dimension_numbers<[1], [0], [0], [1], [0, 0, 1, 1], [], []>} : vector<72x64xbf16>, vector<64x128xbf16>, vector<72x128xf32> -> vector<72x128xf32>
    %68 = arith.addf %62, %67 : vector<72x128xf32>
    %c26 = arith.constant 26 : index
    %c0_56 = arith.constant 0 : index
    %69 = vector.load %arg11[%c26, %c0_56] : memref<100x64xf32, #tpu.memory_space<vmem>>, vector<72x64xf32>
    %70 = arith.truncf %69 : vector<72x64xf32> to vector<72x64xbf16>
    %c7 = arith.constant 7 : index
    %c0_57 = arith.constant 0 : index
    %c0_58 = arith.constant 0 : index
    %71 = vector.load %arg4[%c7, %c0_57, %c0_58] : memref<9x64x128xbf16, #tpu.memory_space<vmem>>, vector<1x64x128xbf16>
    %72 = vector.shape_cast %71 : vector<1x64x128xbf16> to vector<64x128xbf16>
    %cst_59 = arith.constant dense<0.000000e+00> : vector<72x128xf32>
    %73 = tpu.matmul %70, %72, %cst_59 {dimension_numbers = #tpu.dot_dimension_numbers<[1], [0], [0], [1], [0, 0, 1, 1], [], []>} : vector<72x64xbf16>, vector<64x128xbf16>, vector<72x128xf32> -> vector<72x128xf32>
    %74 = arith.addf %68, %73 : vector<72x128xf32>
    %c28 = arith.constant 28 : index
    %c0_60 = arith.constant 0 : index
    %75 = vector.load %arg11[%c28, %c0_60] : memref<100x64xf32, #tpu.memory_space<vmem>>, vector<72x64xf32>
    %76 = arith.truncf %75 : vector<72x64xf32> to vector<72x64xbf16>
    %c8 = arith.constant 8 : index
    %c0_61 = arith.constant 0 : index
    %c0_62 = arith.constant 0 : index
    %77 = vector.load %arg4[%c8, %c0_61, %c0_62] : memref<9x64x128xbf16, #tpu.memory_space<vmem>>, vector<1x64x128xbf16>
    %78 = vector.shape_cast %77 : vector<1x64x128xbf16> to vector<64x128xbf16>
    %cst_63 = arith.constant dense<0.000000e+00> : vector<72x128xf32>
    %79 = tpu.matmul %76, %78, %cst_63 {dimension_numbers = #tpu.dot_dimension_numbers<[1], [0], [0], [1], [0, 0, 1, 1], [], []>} : vector<72x64xbf16>, vector<64x128xbf16>, vector<72x128xf32> -> vector<72x128xf32>
    %80 = arith.addf %74, %79 : vector<72x128xf32>
    %81 = vector.extract_strided_slice %80 {offsets = [0, 0], sizes = [72, 32], strides = [1, 1]} : vector<72x128xf32> to vector<72x32xf32>
    %82 = vector.extract_strided_slice %80 {offsets = [0, 32], sizes = [72, 32], strides = [1, 1]} : vector<72x128xf32> to vector<72x32xf32>
    %83 = arith.maximumf %81, %82 : vector<72x32xf32>
    %84 = vector.extract_strided_slice %80 {offsets = [0, 64], sizes = [72, 32], strides = [1, 1]} : vector<72x128xf32> to vector<72x32xf32>
    %85 = vector.extract_strided_slice %80 {offsets = [0, 96], sizes = [72, 32], strides = [1, 1]} : vector<72x128xf32> to vector<72x32xf32>
    %86 = arith.maximumf %84, %85 : vector<72x32xf32>
    %87 = arith.maximumf %83, %86 : vector<72x32xf32>
    %c0_64 = arith.constant 0 : index
    %c0_65 = arith.constant 0 : index
    %88 = vector.load %arg5[%c0_64, %c0_65] : memref<1x32xf32, #tpu.memory_space<vmem>>, vector<1x32xf32>
    %89 = vector.broadcast %88 : vector<1x32xf32> to vector<72x32xf32>
    %90 = arith.addf %87, %89 : vector<72x32xf32>
    %cst_66 = arith.constant 0.000000e+00 : f32
    %91 = vector.broadcast %cst_66 : f32 to vector<72x32xf32>
    %92 = arith.maximumf %90, %91 : vector<72x32xf32>
    %93 = vector.extract_strided_slice %92 {offsets = [0, 0], sizes = [2, 20], strides = [1, 1]} : vector<72x32xf32> to vector<2x20xf32>
    %c0_67 = arith.constant 0 : index
    %c0_68 = arith.constant 0 : index
    %94 = vector.load %arg12[%c0_67, %c0_68] : memref<2x320xf32, #tpu.memory_space<vmem>>, vector<2x20xf32>
    tpu.vector_store %arg12[%c0_67, %c0_68], %93 {strides = array<i32>} : memref<2x320xf32, #tpu.memory_space<vmem>>, vector<2x20xf32>,
    %95 = vector.extract_strided_slice %92 {offsets = [2, 0], sizes = [2, 20], strides = [1, 1]} : vector<72x32xf32> to vector<2x20xf32>
    %c0_69 = arith.constant 0 : index
    %c20 = arith.constant 20 : index
    %96 = vector.load %arg12[%c0_69, %c20] : memref<2x320xf32, #tpu.memory_space<vmem>>, vector<2x20xf32>
    tpu.vector_store %arg12[%c0_69, %c20], %95 {strides = array<i32>} : memref<2x320xf32, #tpu.memory_space<vmem>>, vector<2x20xf32>,
    %97 = vector.extract_strided_slice %92 {offsets = [4, 0], sizes = [2, 20], strides = [1, 1]} : vector<72x32xf32> to vector<2x20xf32>
    %c0_70 = arith.constant 0 : index
    %c40 = arith.constant 40 : index
    %98 = vector.load %arg12[%c0_70, %c40] : memref<2x320xf32, #tpu.memory_space<vmem>>, vector<2x20xf32>
    tpu.vector_store %arg12[%c0_70, %c40], %97 {strides = array<i32>} : memref<2x320xf32, #tpu.memory_space<vmem>>, vector<2x20xf32>,
    %99 = vector.extract_strided_slice %92 {offsets = [6, 0], sizes = [2, 20], strides = [1, 1]} : vector<72x32xf32> to vector<2x20xf32>
    %c0_71 = arith.constant 0 : index
    %c60 = arith.constant 60 : index
    %100 = vector.load %arg12[%c0_71, %c60] : memref<2x320xf32, #tpu.memory_space<vmem>>, vector<2x20xf32>
    tpu.vector_store %arg12[%c0_71, %c60], %99 {strides = array<i32>} : memref<2x320xf32, #tpu.memory_space<vmem>>, vector<2x20xf32>,
    %101 = vector.extract_strided_slice %92 {offsets = [12, 0], sizes = [2, 20], strides = [1, 1]} : vector<72x32xf32> to vector<2x20xf32>
    %c0_72 = arith.constant 0 : index
    %c80 = arith.constant 80 : index
    %102 = vector.load %arg12[%c0_72, %c80] : memref<2x320xf32, #tpu.memory_space<vmem>>, vector<2x20xf32>
    tpu.vector_store %arg12[%c0_72, %c80], %101 {strides = array<i32>} : memref<2x320xf32, #tpu.memory_space<vmem>>, vector<2x20xf32>,
    %103 = vector.extract_strided_slice %92 {offsets = [14, 0], sizes = [2, 20], strides = [1, 1]} : vector<72x32xf32> to vector<2x20xf32>
    %c0_73 = arith.constant 0 : index
    %c100 = arith.constant 100 : index
    %104 = vector.load %arg12[%c0_73, %c100] : memref<2x320xf32, #tpu.memory_space<vmem>>, vector<2x20xf32>
    tpu.vector_store %arg12[%c0_73, %c100], %103 {strides = array<i32>} : memref<2x320xf32, #tpu.memory_space<vmem>>, vector<2x20xf32>,
    %105 = vector.extract_strided_slice %92 {offsets = [16, 0], sizes = [2, 20], strides = [1, 1]} : vector<72x32xf32> to vector<2x20xf32>
    %c0_74 = arith.constant 0 : index
    %c120 = arith.constant 120 : index
    %106 = vector.load %arg12[%c0_74, %c120] : memref<2x320xf32, #tpu.memory_space<vmem>>, vector<2x20xf32>
    tpu.vector_store %arg12[%c0_74, %c120], %105 {strides = array<i32>} : memref<2x320xf32, #tpu.memory_space<vmem>>, vector<2x20xf32>,
    %107 = vector.extract_strided_slice %92 {offsets = [18, 0], sizes = [2, 20], strides = [1, 1]} : vector<72x32xf32> to vector<2x20xf32>
    %c0_75 = arith.constant 0 : index
    %c140 = arith.constant 140 : index
    %108 = vector.load %arg12[%c0_75, %c140] : memref<2x320xf32, #tpu.memory_space<vmem>>, vector<2x20xf32>
    tpu.vector_store %arg12[%c0_75, %c140], %107 {strides = array<i32>} : memref<2x320xf32, #tpu.memory_space<vmem>>, vector<2x20xf32>,
    %109 = vector.extract_strided_slice %92 {offsets = [24, 0], sizes = [2, 20], strides = [1, 1]} : vector<72x32xf32> to vector<2x20xf32>
    %c0_76 = arith.constant 0 : index
    %c160 = arith.constant 160 : index
    %110 = vector.load %arg12[%c0_76, %c160] : memref<2x320xf32, #tpu.memory_space<vmem>>, vector<2x20xf32>
    tpu.vector_store %arg12[%c0_76, %c160], %109 {strides = array<i32>} : memref<2x320xf32, #tpu.memory_space<vmem>>, vector<2x20xf32>,
    %111 = vector.extract_strided_slice %92 {offsets = [26, 0], sizes = [2, 20], strides = [1, 1]} : vector<72x32xf32> to vector<2x20xf32>
    %c0_77 = arith.constant 0 : index
    %c180 = arith.constant 180 : index
    %112 = vector.load %arg12[%c0_77, %c180] : memref<2x320xf32, #tpu.memory_space<vmem>>, vector<2x20xf32>
    tpu.vector_store %arg12[%c0_77, %c180], %111 {strides = array<i32>} : memref<2x320xf32, #tpu.memory_space<vmem>>, vector<2x20xf32>,
    %113 = vector.extract_strided_slice %92 {offsets = [28, 0], sizes = [2, 20], strides = [1, 1]} : vector<72x32xf32> to vector<2x20xf32>
    %c0_78 = arith.constant 0 : index
    %c200 = arith.constant 200 : index
    %114 = vector.load %arg12[%c0_78, %c200] : memref<2x320xf32, #tpu.memory_space<vmem>>, vector<2x20xf32>
    tpu.vector_store %arg12[%c0_78, %c200], %113 {strides = array<i32>} : memref<2x320xf32, #tpu.memory_space<vmem>>, vector<2x20xf32>,
    %115 = vector.extract_strided_slice %92 {offsets = [30, 0], sizes = [2, 20], strides = [1, 1]} : vector<72x32xf32> to vector<2x20xf32>
    %c0_79 = arith.constant 0 : index
    %c220 = arith.constant 220 : index
    %116 = vector.load %arg12[%c0_79, %c220] : memref<2x320xf32, #tpu.memory_space<vmem>>, vector<2x20xf32>
    tpu.vector_store %arg12[%c0_79, %c220], %115 {strides = array<i32>} : memref<2x320xf32, #tpu.memory_space<vmem>>, vector<2x20xf32>,
    %117 = vector.extract_strided_slice %92 {offsets = [36, 0], sizes = [2, 20], strides = [1, 1]} : vector<72x32xf32> to vector<2x20xf32>
    %c0_80 = arith.constant 0 : index
    %c240 = arith.constant 240 : index
    %118 = vector.load %arg12[%c0_80, %c240] : memref<2x320xf32, #tpu.memory_space<vmem>>, vector<2x20xf32>
    tpu.vector_store %arg12[%c0_80, %c240], %117 {strides = array<i32>} : memref<2x320xf32, #tpu.memory_space<vmem>>, vector<2x20xf32>,
    %119 = vector.extract_strided_slice %92 {offsets = [38, 0], sizes = [2, 20], strides = [1, 1]} : vector<72x32xf32> to vector<2x20xf32>
    %c0_81 = arith.constant 0 : index
    %c260 = arith.constant 260 : index
    %120 = vector.load %arg12[%c0_81, %c260] : memref<2x320xf32, #tpu.memory_space<vmem>>, vector<2x20xf32>
    tpu.vector_store %arg12[%c0_81, %c260], %119 {strides = array<i32>} : memref<2x320xf32, #tpu.memory_space<vmem>>, vector<2x20xf32>,
    %121 = vector.extract_strided_slice %92 {offsets = [40, 0], sizes = [2, 20], strides = [1, 1]} : vector<72x32xf32> to vector<2x20xf32>
    %c0_82 = arith.constant 0 : index
    %c280 = arith.constant 280 : index
    %122 = vector.load %arg12[%c0_82, %c280] : memref<2x320xf32, #tpu.memory_space<vmem>>, vector<2x20xf32>
    tpu.vector_store %arg12[%c0_82, %c280], %121 {strides = array<i32>} : memref<2x320xf32, #tpu.memory_space<vmem>>, vector<2x20xf32>,
    %123 = vector.extract_strided_slice %92 {offsets = [42, 0], sizes = [2, 20], strides = [1, 1]} : vector<72x32xf32> to vector<2x20xf32>
    %c0_83 = arith.constant 0 : index
    %c300 = arith.constant 300 : index
    %124 = vector.load %arg12[%c0_83, %c300] : memref<2x320xf32, #tpu.memory_space<vmem>>, vector<2x20xf32>
    tpu.vector_store %arg12[%c0_83, %c300], %123 {strides = array<i32>} : memref<2x320xf32, #tpu.memory_space<vmem>>, vector<2x20xf32>,
    %c0_84 = arith.constant 0 : index
    %c0_85 = arith.constant 0 : index
    %125 = vector.load %arg12[%c0_84, %c0_85] : memref<2x320xf32, #tpu.memory_space<vmem>>, vector<2x320xf32>
    %126 = arith.truncf %125 : vector<2x320xf32> to vector<2x320xbf16>
    %c0_86 = arith.constant 0 : index
    %c0_87 = arith.constant 0 : index
    %127 = vector.load %arg6[%c0_86, %c0_87] : memref<320x128xbf16, #tpu.memory_space<vmem>>, vector<320x128xbf16>
    %cst_88 = arith.constant dense<0.000000e+00> : vector<2x128xf32>
    %128 = tpu.matmul %126, %127, %cst_88 {dimension_numbers = #tpu.dot_dimension_numbers<[1], [0], [0], [1], [0, 0, 1, 1], [], []>} : vector<2x320xbf16>, vector<320x128xbf16>, vector<2x128xf32> -> vector<2x128xf32>
    %c0_89 = arith.constant 0 : index
    %c0_90 = arith.constant 0 : index
    %129 = vector.load %arg7[%c0_89, %c0_90] : memref<1x128xf32, #tpu.memory_space<vmem>>, vector<1x128xf32>
    %130 = vector.broadcast %129 : vector<1x128xf32> to vector<2x128xf32>
    %131 = arith.addf %128, %130 : vector<2x128xf32>
    %cst_91 = arith.constant 0.000000e+00 : f32
    %132 = vector.broadcast %cst_91 : f32 to vector<2x128xf32>
    %133 = arith.maximumf %131, %132 : vector<2x128xf32>
    %134 = vector.extract_strided_slice %133 {offsets = [0, 0], sizes = [2, 64], strides = [1, 1]} : vector<2x128xf32> to vector<2x64xf32>
    %135 = arith.truncf %134 : vector<2x64xf32> to vector<2x64xbf16>
    %c0_92 = arith.constant 0 : index
    %c0_93 = arith.constant 0 : index
    %136 = vector.load %arg8[%c0_92, %c0_93] : memref<64x128xbf16, #tpu.memory_space<vmem>>, vector<64x128xbf16>
    %cst_94 = arith.constant dense<0.000000e+00> : vector<2x128xf32>
    %137 = tpu.matmul %135, %136, %cst_94 {dimension_numbers = #tpu.dot_dimension_numbers<[1], [0], [0], [1], [0, 0, 1, 1], [], []>} : vector<2x64xbf16>, vector<64x128xbf16>, vector<2x128xf32> -> vector<2x128xf32>
    %c0_95 = arith.constant 0 : index
    %c0_96 = arith.constant 0 : index
    %138 = vector.load %arg9[%c0_95, %c0_96] : memref<1x128xf32, #tpu.memory_space<vmem>>, vector<1x128xf32>
    %139 = vector.broadcast %138 : vector<1x128xf32> to vector<2x128xf32>
    %140 = arith.addf %137, %139 : vector<2x128xf32>
    %141 = tpu.iota {dimensions = array<i32: 1>} : vector<2x128xi32>
    %c10_i32 = arith.constant 10 : i32
    %142 = vector.broadcast %c10_i32 : i32 to vector<2x128xi32>
    %143 = arith.cmpi slt, %141, %142 : vector<2x128xi32>
    %cst_97 = arith.constant 0xFF800000 : f32
    %144 = vector.broadcast %cst_97 : f32 to vector<2x128xf32>
    %145 = arith.select %143, %140, %144 : vector<2x128xi1>, vector<2x128xf32>
    %cst_98 = arith.constant dense<0xFF800000> : vector<2xf32>
    %146 = vector.multi_reduction <maximumf>, %145, %cst_98 [1] : vector<2x128xf32> to vector<2xf32>
    %147 = vector.shape_cast %146 : vector<2xf32> to vector<2x1xf32>
    %148 = vector.broadcast %147 : vector<2x1xf32> to vector<2x128xf32>
    %149 = arith.subf %145, %148 : vector<2x128xf32>
    %150 = math.exp %149 : vector<2x128xf32>
    %cst_99 = arith.constant dense<0.000000e+00> : vector<2xf32>
    %151 = vector.multi_reduction <add>, %150, %cst_99 [1] : vector<2x128xf32> to vector<2xf32>
    %152 = vector.shape_cast %151 : vector<2xf32> to vector<2x1xf32>
    %153 = math.log %152 : vector<2x1xf32>
    %154 = vector.broadcast %153 : vector<2x1xf32> to vector<2x128xf32>
    %155 = arith.subf %149, %154 : vector<2x128xf32>
    %c0_100 = arith.constant 0 : index
    %c0_101 = arith.constant 0 : index
    %156 = vector.load %arg10[%c0_100, %c0_101] : memref<2x128xf32, #tpu.memory_space<vmem>>, vector<2x128xf32>
    tpu.vector_store %arg10[%c0_100, %c0_101], %155 {strides = array<i32>} : memref<2x128xf32, #tpu.memory_space<vmem>>, vector<2x128xf32>,
    return
  }
  func.func @transform_0(%arg0: i32) -> (i32, i32) {
    %c0_i32 = arith.constant 0 : i32
    %c0_i32_0 = arith.constant 0 : i32
    %c0_i32_1 = arith.constant 0 : i32
    return %c0_i32, %c0_i32_0 : i32, i32
  }
  func.func @transform_1(%arg0: i32) -> (i32, i32) {
    %c0_i32 = arith.constant 0 : i32
    %c0_i32_0 = arith.constant 0 : i32
    %c0_i32_1 = arith.constant 0 : i32
    return %c0_i32, %c0_i32_0 : i32, i32
  }
  func.func @transform_2(%arg0: i32) -> (i32, i32) {
    %c0_i32 = arith.constant 0 : i32
    %c0_i32_0 = arith.constant 0 : i32
    %c0_i32_1 = arith.constant 0 : i32
    return %c0_i32, %c0_i32_0 : i32, i32
  }
  func.func @transform_3(%arg0: i32) -> (i32, i32, i32) {
    %c0_i32 = arith.constant 0 : i32
    %c0_i32_0 = arith.constant 0 : i32
    %c0_i32_1 = arith.constant 0 : i32
    %c0_i32_2 = arith.constant 0 : i32
    return %c0_i32, %c0_i32_0, %c0_i32_1 : i32, i32, i32
  }
  func.func @transform_4(%arg0: i32) -> (i32, i32) {
    %c0_i32 = arith.constant 0 : i32
    %c0_i32_0 = arith.constant 0 : i32
    %c0_i32_1 = arith.constant 0 : i32
    return %c0_i32, %c0_i32_0 : i32, i32
  }
  func.func @transform_5(%arg0: i32) -> (i32, i32) {
    %c0_i32 = arith.constant 0 : i32
    %c0_i32_0 = arith.constant 0 : i32
    %c0_i32_1 = arith.constant 0 : i32
    return %c0_i32, %c0_i32_0 : i32, i32
  }
  func.func @transform_6(%arg0: i32) -> (i32, i32) {
    %c0_i32 = arith.constant 0 : i32
    %c0_i32_0 = arith.constant 0 : i32
    %c0_i32_1 = arith.constant 0 : i32
    return %c0_i32, %c0_i32_0 : i32, i32
  }
  func.func @transform_7(%arg0: i32) -> (i32, i32) {
    %c0_i32 = arith.constant 0 : i32
    %c0_i32_0 = arith.constant 0 : i32
    %c0_i32_1 = arith.constant 0 : i32
    return %c0_i32, %c0_i32_0 : i32, i32
  }
  func.func @transform_8(%arg0: i32) -> (i32, i32) {
    %c0_i32 = arith.constant 0 : i32
    %c0_i32_0 = arith.constant 0 : i32
    %c0_i32_1 = arith.constant 0 : i32
    return %c0_i32, %c0_i32_0 : i32, i32
  }
  func.func @transform_9(%arg0: i32) -> (i32, i32) {
    %c0_i32 = arith.constant 0 : i32
    %c0_i32_0 = arith.constant 0 : i32
    %c0_i32_1 = arith.constant 0 : i32
    return %c0_i32, %c0_i32_0 : i32, i32
  }
}

</mosaic_0001>

<bundles_post_ra>
// kernel: net_forward.1
= control target key start
LH: loop header
LB: loop body
LE: loop exit
PB: predicated region body
PF: predicated region fallthrough
CT: control target
= control target key end

     0   :  { %vm176_vm0 = vcmask 261120   ;;  %s6136_s0 = inlined_call_operand.vmem [shape: bf16[1152,32], index: 0, kind: input, shape index: {}]   ;;  %s6137_s1 = inlined_call_operand.vmem [shape: bf16[32,128], index: 1, kind: input, shape index: {}]   ;;  %s6138_s2 = inlined_call_operand.vmem [shape: f32[1,128], index: 2, kind: input, shape index: {}]   ;;  %s6139_s3 = inlined_call_operand.vmem [shape: bf16[9,64,128], index: 3, kind: input, shape index: {}]   ;;  %s6140_s4 = inlined_call_operand.vmem [shape: f32[1,32], index: 4, kind: input, shape index: {}]   ;;  %s6141_s5 = inlined_call_operand.vmem [shape: bf16[320,128], index: 5, kind: input, shape index: {}]   ;;  %s6142_s6 = inlined_call_operand.vmem [shape: f32[1,128], index: 6, kind: input, shape index: {}]   ;;  %s6143_s7 = inlined_call_operand.vmem [shape: bf16[64,128], index: 7, kind: input, shape index: {}]   ;;  %s6144_s8 = inlined_call_operand.vmem [shape: f32[1,128], index: 8, kind: input, shape index: {}]   ;;  %s6145_s9 = inlined_call_operand.hbm [shape: f32[2,128], index: 9, kind: output, shape index: {}]  }
   0x1   :  { %v4638_v0 = vld [vmem:[%s6137_s1 + $0x8] sm:$0xff]   ;;  %v4639_v1 = vld [vmem:[%s6137_s1] sm:$0xff]   ;;  %v4641_v3 = vld [vmem:[%s6136_s0 + $0x90] sm:$0xff]  }
   0x2   :  { %4179 = vmatprep.subr.bf16.mxu0 %v4638_v0  ;;  %4219 = vmatprep.subr.bf16.mxu1 %v4638_v0  ;;  %v4640_v2 = vld [vmem:[%s6136_s0] sm:$0xff]   ;;  %v4642_v4 = vld [vmem:[%s6136_s0 + $0x8] sm:$0xff]   ;;  %v4643_v5 = vld [vmem:[%s6136_s0 + $0x98] sm:$0xff]  }
   0x3   :  { %4180 = vmatpush3.bf16.msra.mxu0 %v4638_v0  ;;  %4220 = vmatpush3.bf16.msra.mxu1 %v4638_v0  ;;  %v4644_v6 = vld [vmem:[%s6136_s0 + $0x10] sm:$0xff]   ;;  %v4645_v7 = vld [vmem:[%s6136_s0 + $0xa0] sm:$0xff]   ;;  %v4646_v8 = vld [vmem:[%s6136_s0 + $0x18] sm:$0xff]  }
   0x4   :  { %4181 = vmatprep.subr.bf16.mxu0 %v4639_v1  ;;  %4221 = vmatprep.subr.bf16.mxu1 %v4639_v1  ;;  %v4647_v9 = vld [vmem:[%s6136_s0 + $0xa8] sm:$0xff]   ;;  %v4648_v10 = vld [vmem:[%s6136_s0 + $0x20] sm:$0xff]   ;;  %v4649_v11 = vld [vmem:[%s6136_s0 + $0xb0] sm:$0xff]  }
   0x5   :  { %4183 = vmatprep.mubr.msk.bf16.mxu0 %vm176_vm0, %v4640_v2  ;;  %4223 = vmatprep.mubr.msk.bf16.mxu1 %vm176_vm0, %v4641_v3  ;;  %v4650_v12 = vld [vmem:[%s6136_s0 + $0x28] sm:$0xff]   ;;  %v4651_v13 = vld [vmem:[%s6136_s0 + $0xb8] sm:$0xff]   ;;  %v4652_v14 = vld [vmem:[%s6136_s0 + $0x30] sm:$0xff]  }
   0x6   :  { %v4653_v15 = vld [vmem:[%s6136_s0 + $0xc0] sm:$0xff]   ;;  %v4654_v16 = vld [vmem:[%s6136_s0 + $0x38] sm:$0xff]   ;;  %v4655_v17 = vld [vmem:[%s6136_s0 + $0xc8] sm:$0xff]  }
   0x7   :  { %4182 = vmatpush3.bf16.msra.mxu0 %v4639_v1  ;;  %4222 = vmatpush3.bf16.msra.mxu1 %v4639_v1  ;;  %v4656_v18 = vld [vmem:[%s6136_s0 + $0x40] sm:$0xff]   ;;  %v4657_v19 = vld [vmem:[%s6136_s0 + $0xd0] sm:$0xff]   ;;  %v4658_v20 = vld [vmem:[%s6136_s0 + $0x48] sm:$0xff]  }
   0x8   :  { %4259 = vmatprep.subr.bf16.mxu0 %v4638_v0  ;;  %4299 = vmatprep.subr.bf16.mxu1 %v4638_v0  ;;  %v4659_v21 = vld [vmem:[%s6136_s0 + $0xd8] sm:$0xff]   ;;  %v4660_v22 = vld [vmem:[%s6136_s0 + $0x50] sm:$0xff]   ;;  %v4661_v23 = vld [vmem:[%s6136_s0 + $0xe0] sm:$0xff]  }
   0x9   :  { %v4662_v24 = vld [vmem:[%s6136_s0 + $0x58] sm:$0xff]   ;;  %v4663_v25 = vld [vmem:[%s6136_s0 + $0xe8] sm:$0xff]   ;;  %v4664_v26 = vld [vmem:[%s6136_s0 + $0x60] sm:$0xff]  }
   0xa   :  { %4184 = vmatmul.mubr.msk.bf16.vlgmr.msra.gmra.mxu0 %vm176_vm0, %v4642_v4  ;;  %4224 = vmatmul.mubr.msk.bf16.vlgmr.msra.gmra.mxu1 %vm176_vm0, %v4643_v5  ;;  %v4665_v27 = vld [vmem:[%s6136_s0 + $0xf0] sm:$0xff]   ;;  %v4666_v28 = vld [vmem:[%s6136_s0 + $0x68] sm:$0xff]   ;;  %v4667_v29 = vld [vmem:[%s6136_s0 + $0xf8] sm:$0xff]  }
   0xb   :  { %4260 = vmatpush3.bf16.msra.mxu0 %v4638_v0  ;;  %4300 = vmatpush3.bf16.msra.mxu1 %v4638_v0  ;;  %v4668_v30 = vld [vmem:[%s6136_s0 + $0x70] sm:$0xff]   ;;  %v4669_v31 = vld [vmem:[%s6136_s0 + $0x100] sm:$0xff]   ;;  %v4670_v32 = vld [vmem:[%s6136_s0 + $0x78] sm:$0xff]  }
   0xc   :  { %4187 = vmatprep.mubr.msk.bf16.mxu0 %vm176_vm0, %v4644_v6  ;;  %4227 = vmatprep.mubr.msk.bf16.mxu1 %vm176_vm0, %v4645_v7  ;;  %v4671_v33 = vld [vmem:[%s6136_s0 + $0x108] sm:$0xff]   ;;  %v4672_v34 = vld [vmem:[%s6136_s0 + $0x80] sm:$0xff]   ;;  %v4673_v35 = vld [vmem:[%s6136_s0 + $0x110] sm:$0xff]  }
   0xd   :  { %4261 = vmatprep.subr.bf16.mxu0 %v4639_v1  ;;  %4301 = vmatprep.subr.bf16.mxu1 %v4639_v1  ;;  %v4674_v36 = vld [vmem:[%s6136_s0 + $0x88] sm:$0xff]   ;;  %v4675_v37 = vld [vmem:[%s6136_s0 + $0x118] sm:$0xff]   ;;  %v4676_v38 = vld [vmem:[%s6136_s0 + $0x120] sm:$0xff]  }
   0xe   :  { %v4677_v39 = vld [vmem:[%s6136_s0 + $0x1b0] sm:$0xff]   ;;  %v4678_v40 = vld [vmem:[%s6136_s0 + $0x128] sm:$0xff]   ;;  %v4679_v41 = vld [vmem:[%s6136_s0 + $0x1b8] sm:$0xff]  }
   0xf   :  { %4262 = vmatpush3.bf16.msra.mxu0 %v4639_v1  ;;  %4302 = vmatpush3.bf16.msra.mxu1 %v4639_v1  ;;  %v4680_v42 = vld [vmem:[%s6136_s0 + $0x130] sm:$0xff]   ;;  %v4681_v43 = vld [vmem:[%s6136_s0 + $0x1c0] sm:$0xff]   ;;  %v4682_v44 = vld [vmem:[%s6136_s0 + $0x138] sm:$0xff]  }
  0x10   :  { %v4683_v45 = vld [vmem:[%s6136_s0 + $0x1c8] sm:$0xff]   ;;  %v4684_v46 = vld [vmem:[%s6136_s0 + $0x140] sm:$0xff]   ;;  %v4685_v47 = vld [vmem:[%s6136_s0 + $0x1d0] sm:$0xff]  }
  0x11   :  { %v4686_v48 = vld [vmem:[%s6136_s0 + $0x148] sm:$0xff]   ;;  %v4687_v49 = vld [vmem:[%s6136_s0 + $0x1d8] sm:$0xff]   ;;  %v4688_v50 = vld [vmem:[%s6136_s0 + $0x150] sm:$0xff]  }
  0x12   :  { %4188 = vmatmul.mubr.msk.bf16.gmra.mxu0 %vm176_vm0, %v4646_v8  ;;  %4228 = vmatmul.mubr.msk.bf16.gmra.mxu1 %vm176_vm0, %v4647_v9  ;;  %v4689_v51 = vld [vmem:[%s6136_s0 + $0x1e0] sm:$0xff]   ;;  %v4690_v52 = vld [vmem:[%s6136_s0 + $0x158] sm:$0xff]   ;;  %v4691_v53 = vld [vmem:[%s6136_s0 + $0x1e8] sm:$0xff]  }
  0x13   :  { %4191 = vmatprep.mubr.msk.bf16.mxu0 %vm176_vm0, %v4648_v10  ;;  %4231 = vmatprep.mubr.msk.bf16.mxu1 %vm176_vm0, %v4649_v11  ;;  %v4692_v54 = vld [vmem:[%s6136_s0 + $0x160] sm:$0xff]   ;;  %v4693_v55 = vld [vmem:[%s6136_s0 + $0x1f0] sm:$0xff]   ;;  %v4694_v56 = vld [vmem:[%s6136_s0 + $0x168] sm:$0xff]  }
  0x14   :  { %v4695_v57 = vld [vmem:[%s6136_s0 + $0x1f8] sm:$0xff]   ;;  %v4696_v58 = vld [vmem:[%s6136_s0 + $0x170] sm:$0xff]   ;;  %v4697_v59 = vld [vmem:[%s6136_s0 + $0x200] sm:$0xff]  }
  0x1a   :  { %4192 = vmatmul.mubr.msk.bf16.gmra.mxu0 %vm176_vm0, %v4650_v12  ;;  %4232 = vmatmul.mubr.msk.bf16.gmra.mxu1 %vm176_vm0, %v4651_v13 }
  0x1b   :  { %4195 = vmatprep.mubr.msk.bf16.mxu0 %vm176_vm0, %v4652_v14  ;;  %4235 = vmatprep.mubr.msk.bf16.mxu1 %vm176_vm0, %v4653_v15 }
  0x22   :  { %4196 = vmatmul.mubr.msk.bf16.gmra.mxu0 %vm176_vm0, %v4654_v16  ;;  %4236 = vmatmul.mubr.msk.bf16.gmra.mxu1 %vm176_vm0, %v4655_v17 }
  0x23   :  { %4199 = vmatprep.mubr.msk.bf16.mxu0 %vm176_vm0, %v4656_v18  ;;  %4239 = vmatprep.mubr.msk.bf16.mxu1 %vm176_vm0, %v4657_v19 }
  0x2a   :  { %4200 = vmatmul.mubr.msk.bf16.gmra.mxu0 %vm176_vm0, %v4658_v20  ;;  %4240 = vmatmul.mubr.msk.bf16.gmra.mxu1 %vm176_vm0, %v4659_v21 }
  0x2b   :  { %4203 = vmatprep.mubr.msk.bf16.mxu0 %vm176_vm0, %v4660_v22  ;;  %4243 = vmatprep.mubr.msk.bf16.mxu1 %vm176_vm0, %v4661_v23 }
  0x32   :  { %4204 = vmatmul.mubr.msk.bf16.gmra.mxu0 %vm176_vm0, %v4662_v24  ;;  %4244 = vmatmul.mubr.msk.bf16.gmra.mxu1 %vm176_vm0, %v4663_v25 }
  0x33   :  { %4207 = vmatprep.mubr.msk.bf16.mxu0 %vm176_vm0, %v4664_v26  ;;  %4247 = vmatprep.mubr.msk.bf16.mxu1 %vm176_vm0, %v4665_v27 }
  0x3a   :  { %4208 = vmatmul.mubr.msk.bf16.gmra.mxu0 %vm176_vm0, %v4666_v28  ;;  %4248 = vmatmul.mubr.msk.bf16.gmra.mxu1 %vm176_vm0, %v4667_v29 }
  0x3b   :  { %4211 = vmatprep.mubr.msk.bf16.mxu0 %vm176_vm0, %v4668_v30  ;;  %4251 = vmatprep.mubr.msk.bf16.mxu1 %vm176_vm0, %v4669_v31 }
  0x42   :  { %4212 = vmatmul.mubr.msk.bf16.gmra.mxu0 %vm176_vm0, %v4670_v32  ;;  %4252 = vmatmul.mubr.msk.bf16.gmra.mxu1 %vm176_vm0, %v4671_v33 }
  0x43   :  { %4215 = vmatprep.mubr.msk.bf16.mxu0 %vm176_vm0, %v4672_v34  ;;  %4255 = vmatprep.mubr.msk.bf16.mxu1 %vm176_vm0, %v4673_v35 }
  0x4a   :  { %4216 = vmatmul.mubr.msk.bf16.gmra.mxu0 %vm176_vm0, %v4674_v36  ;;  %4256 = vmatmul.mubr.msk.bf16.gmra.mxu1 %vm176_vm0, %v4675_v37 }
  0x4b   :  { %4263 = vmatprep.mubr.msk.bf16.mxu0 %vm176_vm0, %v4676_v38  ;;  %4303 = vmatprep.mubr.msk.bf16.mxu1 %vm176_vm0, %v4677_v39 }
  0x52   :  { %4264 = vmatmul.mubr.msk.bf16.vlgmr.msra.gmra.mxu0 %vm176_vm0, %v4678_v40  ;;  %4304 = vmatmul.mubr.msk.bf16.vlgmr.msra.gmra.mxu1 %vm176_vm0, %v4679_v41 }
  0x53   :  { %4267 = vmatprep.mubr.msk.bf16.mxu0 %vm176_vm0, %v4680_v42  ;;  %4307 = vmatprep.mubr.msk.bf16.mxu1 %vm176_vm0, %v4681_v43 }
  0x5a   :  { %4268 = vmatmul.mubr.msk.bf16.gmra.mxu0 %vm176_vm0, %v4682_v44  ;;  %4308 = vmatmul.mubr.msk.bf16.gmra.mxu1 %vm176_vm0, %v4683_v45 }
  0x5b   :  { %4271 = vmatprep.mubr.msk.bf16.mxu0 %vm176_vm0, %v4684_v46  ;;  %4311 = vmatprep.mubr.msk.bf16.mxu1 %vm176_vm0, %v4685_v47 }
  0x62   :  { %4272 = vmatmul.mubr.msk.bf16.gmra.mxu0 %vm176_vm0, %v4686_v48  ;;  %4312 = vmatmul.mubr.msk.bf16.gmra.mxu1 %vm176_vm0, %v4687_v49 }
  0x63   :  { %4275 = vmatprep.mubr.msk.bf16.mxu0 %vm176_vm0, %v4688_v50  ;;  %4315 = vmatprep.mubr.msk.bf16.mxu1 %vm176_vm0, %v4689_v51 }
  0x6a   :  { %4276 = vmatmul.mubr.msk.bf16.gmra.mxu0 %vm176_vm0, %v4690_v52  ;;  %4316 = vmatmul.mubr.msk.bf16.gmra.mxu1 %vm176_vm0, %v4691_v53 }
  0x6b   :  { %4279 = vmatprep.mubr.msk.bf16.mxu0 %vm176_vm0, %v4692_v54  ;;  %4319 = vmatprep.mubr.msk.bf16.mxu1 %vm176_vm0, %v4693_v55 }
  0x72   :  { %4280 = vmatmul.mubr.msk.bf16.gmra.mxu0 %vm176_vm0, %v4694_v56  ;;  %4320 = vmatmul.mubr.msk.bf16.gmra.mxu1 %vm176_vm0, %v4695_v57 }
  0x73   :  { %14 = vsyncpa [#allocation5], 0  ;;  %4283 = vmatprep.mubr.msk.bf16.mxu0 %vm176_vm0, %v4696_v58  ;;  %4323 = vmatprep.mubr.msk.bf16.mxu1 %vm176_vm0, %v4697_v59  ;;  %v4698_v60 = vld [vmem:[%s6136_s0 + $0x178] sm:$0xff]   ;;  %v4699_v61 = vld [vmem:[%s6136_s0 + $0x208] sm:$0xff]   ;;  %vm1666_vm1 = vcmask 130048   ;;  %s4800_s28 = smov 16  }
  0x74   :  { %v4700_v62 = vld [vmem:[%s6136_s0 + $0x180] sm:$0xff]   ;;  %v4701_v63 = vld [vmem:[%s6136_s0 + $0x210] sm:$0xff]   ;;  %v4702_v0 = vld [vmem:[%s6136_s0 + $0x188] sm:$0xff]   ;;  %s4801_s12 = smov 32   ;;  %s4802_s20 = smov 48   ;;  %vm4803_vm2 = vmmov 0  }
  0x75   :  { %v4703_v1 = vld [vmem:[%s6136_s0 + $0x218] sm:$0xff]   ;;  %v4704_v2 = vld [vmem:[%s6136_s0 + $0x190] sm:$0xff]   ;;  %v4705_v3 = vld [vmem:[%s6136_s0 + $0x220] sm:$0xff]   ;;  %vm1712_vm3 = vcmask 261248   ;;  %vm1758_vm4 = vcmask 392448   ;;  %vm1804_vm5 = vcmask 523648  }
  0x76   :  { %v4706_v4 = vld [vmem:[%s6136_s0 + $0x198] sm:$0xff]   ;;  %v4707_v5 = vld [vmem:[%s6136_s0 + $0x228] sm:$0xff]   ;;  %v4708_v6 = vld [vmem:[%s6136_s0 + $0x1a0] sm:$0xff]   ;;  %vm1883_vm6 = vcmask 523264   ;;  %s4805_s29 = smov 64   ;;  %vm3114_vm7 = vcmask 156672  }
  0x77   :  { %v4710_v7 = vld [vmem:[%s6136_s0 + $0x230] sm:$0xff]   ;;  %v4709_v8 = vld [vmem:[%s6136_s0 + $0x1a8] sm:$0xff]   ;;  %v4711_v9 = vld [vmem:[%s6136_s0 + $0x238] sm:$0xff]   ;;  %s4808_s21 = smov 40   ;;  %s4809_s0 = smov 60   ;;  %vm3128_vm8 = vcmask 320672  }
  0x78   :  { %s4810_s24 = smov 120   ;;  %s4812_s30 = smov 100   ;;  %vm3141_vm9 = vcmask 484672   ;;  %vm3147_vm10 = vcmask 648672   ;;  %vm3161_vm11 = vcmask 812672   ;;  %vm3183_vm12 = vcmask 1042368  }
  0x79   :  { %s4813_s13 = smov 12   ;;  %s4815_s18 = smov 112   ;;  %vm3184_vm13 = vcmask 93186   ;;  %vm3180_vm14 = vcmask 982016   ;;  %vm3167_vm15 = vcmask 976672  }
  0x7a   :  { %4284 = vmatmul.mubr.msk.bf16.gmra.mxu0 %vm176_vm0, %v4698_v60  ;;  %4324 = vmatmul.mubr.msk.bf16.gmra.mxu1 %vm176_vm0, %v4699_v61  ;;  %s4816_s23 = smov 72   ;;  %s4818_s26 = smov 4  }
  0x7b   :  { %4287 = vmatprep.mubr.msk.bf16.mxu0 %vm176_vm0, %v4700_v62  ;;  %4327 = vmatprep.mubr.msk.bf16.mxu1 %vm176_vm0, %v4701_v63  ;;  %s4820_s27 = smov 44  }
  0x82   :  { %4288 = vmatmul.mubr.msk.bf16.gmra.mxu0 %vm176_vm0, %v4702_v0  ;;  %4328 = vmatmul.mubr.msk.bf16.gmra.mxu1 %vm176_vm0, %v4703_v1 }
  0x83   :  { %4291 = vmatprep.mubr.msk.bf16.mxu0 %vm176_vm0, %v4704_v2  ;;  %4331 = vmatprep.mubr.msk.bf16.mxu1 %vm176_vm0, %v4705_v3 }
  0x8a   :  { %4292 = vmatmul.mubr.msk.bf16.gmra.mxu0 %vm176_vm0, %v4706_v4  ;;  %4332 = vmatmul.mubr.msk.bf16.gmra.mxu1 %vm176_vm0, %v4707_v5  ;;  %v4712_v4 = vld [vmem:[%s6139_s3 + $0x38] sm:$0xff]  }
  0x8b   :  { %4295 = vmatprep.mubr.msk.bf16.mxu0 %vm176_vm0, %v4708_v6  ;;  %4335 = vmatprep.mubr.msk.bf16.mxu1 %vm176_vm0, %v4710_v7  ;;  %v6146_v7 = vmov 0.0  }
  0x8c   :  { %4339 = vmatprep.subr.bf16.mxu0 %v6146_v7  ;;  %4367 = vmatprep.subr.bf16.mxu1 %v6146_v7 }
  0x8d   :  { %4340 = vmatpush3.bf16.msra.mxu0 %v4712_v4 }
  0x8e   :  { %4341 = vmatprep.subr.bf16.mxu0 %v6146_v7 }
  0x92   :  { %4296 = vmatmul.mubr.msk.bf16.gmra.mxu0 %vm176_vm0, %v4709_v8  ;;  %4336 = vmatmul.mubr.msk.bf16.gmra.mxu1 %vm176_vm0, %v4711_v9  ;;  %vm3185_vm0 = vmor %vm3184_vm13, %vm3183_vm12  ;;  %vm3254_vm12 = vcmask 189472   ;;  %vm3267_vm13 = vcmask 353472  }
  0xca   :  { %v5166_v10 = vpop.f32.mrf.mxu0  ;;  %v5168_v11 = vpop.f32.mrf.mxu1 }
  0xcc   :  { %v5172_v13 = vpop.f32.mrf.mxu0  ;;  %v5174_v14 = vpop.f32.mrf.mxu1 }
  0xce   :  { %v5178_v16 = vpop.f32.mrf.mxu0  ;;  %v5180_v17 = vpop.f32.mrf.mxu1 }
  0xd0   :  { %v5184_v19 = vpop.f32.mrf.mxu0  ;;  %v5186_v20 = vpop.f32.mrf.mxu1 }
  0xd2   :  { %v5188_v21 = vpop.f32.mrf.mxu0  ;;  %v5190_v22 = vpop.f32.mrf.mxu1 }
  0xd4   :  { %v5194_v24 = vpop.f32.mrf.mxu0  ;;  %v5196_v25 = vpop.f32.mrf.mxu1 }
  0xd6   :  { %v5200_v27 = vpop.f32.mrf.mxu0  ;;  %v5202_v28 = vpop.f32.mrf.mxu1 }
  0xd8   :  { %v5206_v30 = vpop.f32.mrf.mxu0  ;;  %v5208_v31 = vpop.f32.mrf.mxu1 }
  0xda   :  { %v5210_v32 = vpop.f32.mrf.mxu0  ;;  %v5212_v33 = vpop.f32.mrf.mxu1 }
  0xdc   :  { %v5216_v35 = vpop.f32.mrf.mxu0  ;;  %v5218_v36 = vpop.f32.mrf.mxu1 }
  0xde   :  { %v5222_v38 = vpop.f32.mrf.mxu0  ;;  %v5224_v39 = vpop.f32.mrf.mxu1 }
  0xe0   :  { %v5228_v41 = vpop.f32.mrf.mxu0  ;;  %v5230_v42 = vpop.f32.mrf.mxu1 }
  0xe2   :  { %v5232_v43 = vpop.f32.mrf.mxu0  ;;  %v5234_v44 = vpop.f32.mrf.mxu1 }
  0xe4   :  { %v5238_v46 = vpop.f32.mrf.mxu0  ;;  %v5240_v47 = vpop.f32.mrf.mxu1 }
  0xe6   :  { %v5244_v49 = vpop.f32.mrf.mxu0  ;;  %v5246_v50 = vpop.f32.mrf.mxu1 }
  0xe7   :  { %6166 = vst [vmem:[#allocation7_spill] sm:$0xff] %v5244_v49  ;;  %6167 = vst [vmem:[#allocation8_spill] sm:$0xff] %v5246_v50 }
  0xe8   :  { %v5250_v52 = vpop.f32.mrf.mxu0  ;;  %v5252_v53 = vpop.f32.mrf.mxu1 }
  0xea   :  { %v5254_v54 = vpop.f32.mrf.mxu0  ;;  %v5256_v55 = vpop.f32.mrf.mxu1 }
  0xec   :  { %v5260_v57 = vpop.f32.mrf.mxu0  ;;  %v5262_v58 = vpop.f32.mrf.mxu1 }
  0xed   :  { %6168 = vst [vmem:[#allocation9_spill] sm:$0xff] %v5260_v57  ;;  %6169 = vst [vmem:[#allocation10_spill] sm:$0xff] %v5262_v58  ;;  %v6191_v58 = vmax.f32 %v5172_v13, %v5174_v14 }
  0xee   :  { %v5266_v60 = vpop.f32.mrf.mxu0  ;;  %v5268_v61 = vpop.f32.mrf.mxu1 }
  0xf0   :  { %v5272_v63 = vpop.f32.mrf.mxu0  ;;  %v5274_v0 = vpop.f32.mrf.mxu1 }
  0xf1   :  { %6170 = vst [vmem:[#allocation11_spill] sm:$0xff] %v5272_v63  ;;  %6171 = vst [vmem:[#allocation12_spill] sm:$0xff] %v5274_v0 }
  0xf2   :  { %v5276_v1 = vpop.f32.mrf.mxu0  ;;  %v5278_v2 = vpop.f32.mrf.mxu1 }
  0xf4   :  { %v5285_v5 = vpop.f32.mrf.mxu0  ;;  %v5287_v6 = vpop.f32.mrf.mxu1 }
  0xf6   :  { %v5293_v9 = vpop.f32.mrf.mxu0  ;;  %v5295_v59 = vpop.f32.mrf.mxu1 }
  0xf7   :  { %6172 = vst [vmem:[#allocation13_spill] sm:$0xff] %v5293_v9  ;;  %6173 = vst [vmem:[#allocation14_spill] sm:$0xff] %v5295_v59 }
  0xf8   :  { %v5300_v45 = vpop.f32.mrf.mxu0  ;;  %v5302_v3 = vpop.f32.mrf.mxu1 }
  0xfa   :  { %v5304_v62 = vpop.f32.mrf.mxu0  ;;  %v5306_v56 = vpop.f32.mrf.mxu1 }
  0xfb   :  { %6174 = vst [vmem:[#allocation15_spill] sm:$0xff] %v5304_v62  ;;  %6175 = vst [vmem:[#allocation16_spill] sm:$0xff] %v5306_v56 }
  0xfc   :  { %v5310_v8 = vpop.f32.mrf.mxu0  ;;  %v5312_v48 = vpop.f32.mrf.mxu1 }
  0xfd   :  { %6176 = vst [vmem:[#allocation17_spill] sm:$0xff] %v5310_v8  ;;  %6177 = vst [vmem:[#allocation18_spill] sm:$0xff] %v5312_v48  ;;  %v5376_v48 = vld [vmem:[%s6138_s2] ss:$0 sm:$0xff]  ;;  %s4819_s2 = smov 24  }
  0xfe   :  { %v5316_v7 = vpop.f32.mrf.mxu0  ;;  %v5318_v51 = vpop.f32.mrf.mxu1 }
 0x100   :  { %v5322_v34 = vpop.f32.mrf.mxu0  ;;  %v5324_v29 = vpop.f32.mrf.mxu1 }
 0x101   :  { %6178 = vst [vmem:[#allocation19_spill] sm:$0xff] %v5322_v34  ;;  %6179 = vst [vmem:[#allocation20_spill] sm:$0xff] %v5324_v29 }
 0x102   :  { %v5326_v26 = vpop.f32.mrf.mxu0  ;;  %v5328_v4 = vpop.f32.mrf.mxu1 }
 0x104   :  { %v5332_v18 = vpop.f32.mrf.mxu0  ;;  %v5334_v40 = vpop.f32.mrf.mxu1 }
 0x106   :  { %v5338_v12 = vpop.f32.mrf.mxu0  ;;  %v5340_v37 = vpop.f32.mrf.mxu1 }
 0x107   :  { %6180 = vst [vmem:[#allocation21_spill] sm:$0xff] %v5338_v12  ;;  %6181 = vst [vmem:[#allocation22_spill] sm:$0xff] %v5340_v37 }
 0x108   :  { %v5344_v62 = vpop.f32.mrf.mxu0  ;;  %v5346_v34 = vpop.f32.mrf.mxu1 }
 0x10a   :  { %v5348_v29 = vpop.f32.mrf.mxu0  ;;  %v5350_v23 = vpop.f32.mrf.mxu1 }
 0x10b   :  { %6182 = vst [vmem:[#allocation23_spill] sm:$0xff] %v5348_v29  ;;  %6183 = vst [vmem:[#allocation24_spill] sm:$0xff] %v5350_v23  ;;  %v6190_v23 = vmax.f32 %v5166_v10, %v5168_v11 }
 0x10c   :  { %v5354_v0 = vpop.f32.mrf.mxu0  ;;  %v5356_v15 = vpop.f32.mrf.mxu1 }
 0x10d   :  { %6184 = vst [vmem:[#allocation25_spill] sm:$0xff] %v5354_v0  ;;  %6185 = vst [vmem:[#allocation26_spill] sm:$0xff] %v5356_v15 }
 0x10e   :  { %v5360_v8 = vpop.f32.mrf.mxu0  ;;  %v5362_v56 = vpop.f32.mrf.mxu1 }
 0x10f   :  { %6186 = vst [vmem:[#allocation27_spill] sm:$0xff] %v5360_v8  ;;  %6187 = vst [vmem:[#allocation28_spill] sm:$0xff] %v5362_v56 }
 0x110   :  { %v5366_v57 = vpop.f32.mrf.mxu0  ;;  %v5368_v59 = vpop.f32.mrf.mxu1 }
 0x111   :  { %6188 = vst [vmem:[#allocation29_spill] sm:$0xff] %v5366_v57  ;;  %6189 = vst [vmem:[#allocation30_spill] sm:$0xff] %v5368_v59  ;;  %v766_v59 = vmax.f32 %v5184_v19, %v5186_v20 }
 0x112   :  { %v4265_v9 = vpop.f32.mrf.mxu0  ;;  %v4305_v63 = vpop.f32.mrf.mxu1 }
 0x113   :  { %v1160_v29 = vmax.f32 %v6190_v23, %v4265_v9  ;;  %v6192_v23 = vmax.f32 %v5178_v16, %v5180_v17 }
 0x114   :  { %v1015_v15 = vpop.f32.mrf.mxu0  ;;  %v1408_v0 = vpop.f32.mrf.mxu1 }
 0x115   :  { %v1553_v50 = vmax.f32 %v1160_v29, %v4305_v63  ;;  %v1158_v56 = vmax.f32 %v6191_v58, %v1015_v15 }
 0x116   :  { %v4266_v8 = vpop.f32.mrf.mxu0  ;;  %v4306_v57 = vpop.f32.mrf.mxu1 }
 0x117   :  { %v1596_v10 = vadd.f32 %v5376_v48, %v1553_v50  ;;  %v1551_v11 = vmax.f32 %v1158_v56, %v1408_v0  ;;  %v1161_v9 = vmax.f32 %v6192_v23, %v4266_v8  ;;  %v6193_v50 = vmax.f32 %v5188_v21, %v5190_v22 }
 0x118   :  { %v1018_v49 = vpop.f32.mrf.mxu0  ;;  %v1411_v37 = vpop.f32.mrf.mxu1 }
 0x119   :  { %v1632_v29 = vmax.f32 %v1596_v10, 0.0  ;;  %v1594_v63 = vadd.f32 %v5376_v48, %v1551_v11  ;;  %v1554_v13 = vmax.f32 %v1161_v9, %v4306_v57  ;;  %v1159_v14 = vmax.f32 %v766_v59, %v1018_v49 }
 0x11a   :  { %v4269_v15 = vpop.f32.mrf.mxu0  ;;  %v4309_v58 = vpop.f32.mrf.mxu1  ;;  %v6194_v49 = vmax.f32 %v5194_v24, %v5196_v25  ;;  %v6195_v9 = vmax.f32 %v5200_v27, %v5202_v28 }
 0x11b   :  { %v1630_v12 = vmax.f32 %v1594_v63, 0.0  ;;  %v1597_v19 = vadd.f32 %v5376_v48, %v1554_v13  ;;  %v1552_v20 = vmax.f32 %v1159_v14, %v1411_v37  ;;  %v1164_v56 = vmax.f32 %v6193_v50, %v4269_v15  ;;  %1669 = vst.msk [vmem:[#allocation2 + $0x10] sm:$0xff] %vm1666_vm1, %v1632_v29  ;;  %v4713_v15 = vld [vmem:[%s6139_s3 + $0x30] sm:$0xff]  }
 0x11c   :  { %v1031_v16 = vpop.f32.mrf.mxu0  ;;  %v1424_v17 = vpop.f32.mrf.mxu1  ;;  %v770_v37 = vmax.f32 %v5206_v30, %v5208_v31  ;;  %4342 = vmatpush3.bf16.msra.mxu0 %v4713_v15 }
 0x11d   :  { %v1633_v0 = vmax.f32 %v1597_v19, 0.0  ;;  %v1595_v8 = vadd.f32 %v5376_v48, %v1552_v20  ;;  %v1557_v10 = vmax.f32 %v1164_v56, %v4309_v58  ;;  %v1162_v57 = vmax.f32 %v6194_v49, %v1031_v16  ;;  %1667 = vst.msk [vmem:[#allocation2] sm:$0xff] %vm1666_vm1, %v1630_v12 }
 0x11e   :  { %v4270_v59 = vpop.f32.mrf.mxu0  ;;  %v4310_v21 = vpop.f32.mrf.mxu1  ;;  %v6196_v19 = vmax.f32 %v5210_v32, %v5212_v33  ;;  %v6198_v49 = vmov 0.0   ;;  %v774_v32 = vmax.f32 %v5228_v41, %v5230_v42 }
 0x11f   :  { %v1631_v22 = vmax.f32 %v1595_v8, 0.0  ;;  %v1600_v11 = vadd.f32 %v5376_v48, %v1557_v10  ;;  %v1555_v23 = vmax.f32 %v1162_v57, %v1424_v17  ;;  %v1165_v29 = vmax.f32 %v6195_v9, %v4270_v59  ;;  %1670 = vst.msk [vmem:[#allocation2 + $0x18] sm:$0xff] %vm1666_vm1, %v1633_v0  ;;  %4343 = vmatprep.subr.bf16.mxu0 %v6198_v49 }
 0x120   :  { %v1034_v63 = vpop.f32.mrf.mxu0  ;;  %v1427_v24 = vpop.f32.mrf.mxu1  ;;  %v6197_v8 = vmax.f32 %v5216_v35, %v5218_v36  ;;  %4375 = vmatprep.mubr.msk.bf16.mxu1 %vm4803_vm2, %v6198_v49  ;;  %4347 = vmatprep.mubr.msk.bf16.mxu0 %vm4803_vm2, %v6198_v49 }
 0x121   :  { %v1636_v25 = vmax.f32 %v1600_v11, 0.0  ;;  %v1598_v12 = vadd.f32 %v5376_v48, %v1555_v23  ;;  %v1558_v13 = vmax.f32 %v1165_v29, %v4310_v21  ;;  %v1163_v14 = vmax.f32 %v770_v37, %v1034_v63  ;;  %1668 = vst.msk [vmem:[#allocation2 + $0x8] sm:$0xff] %vm1666_vm1, %v1631_v22 }
 0x122   :  { %v4273_v30 = vpop.f32.mrf.mxu0  ;;  %v4313_v31 = vpop.f32.mrf.mxu1  ;;  %v6199_v21 = vmax.f32 %v5222_v38, %v5224_v39 }
 0x123   :  { %v1634_v58 = vmax.f32 %v1598_v12, 0.0  ;;  %v1601_v27 = vadd.f32 %v5376_v48, %v1558_v13  ;;  %v1556_v28 = vmax.f32 %v1163_v14, %v1427_v24  ;;  %v1168_v20 = vmax.f32 %v6196_v19, %v4273_v30  ;;  %1673 = vst.msk [vmem:[#allocation2 + $0x30] sm:$0xff] %vm1666_vm1, %v1636_v25 }
 0x124   :  { %v1047_v50 = vpop.f32.mrf.mxu0  ;;  %v1440_v56 = vpop.f32.mrf.mxu1  ;;  %v6200_v14 = vmax.f32 %v5238_v46, %v5240_v47 }
 0x125   :  { %v1637_v16 = vmax.f32 %v1601_v27, 0.0  ;;  %v1599_v17 = vadd.f32 %v5376_v48, %v1556_v28  ;;  %v1561_v0 = vmax.f32 %v1168_v20, %v4313_v31  ;;  %v1166_v10 = vmax.f32 %v6197_v8, %v1047_v50  ;;  %1671 = vst.msk [vmem:[#allocation2 + $0x20] sm:$0xff] %vm1666_vm1, %v1634_v58 }
 0x126   :  { %v4274_v33 = vpop.f32.mrf.mxu0  ;;  %v4314_v57 = vpop.f32.mrf.mxu1  ;;  %v778_v27 = vmax.f32 %v5250_v52, %v5252_v53  ;;  %v6201_v52 = vmax.f32 %v5254_v54, %v5256_v55  ;;  %v6202_v55 = vmax.f32 %v5266_v60, %v5268_v61  ;;  %v6203_v60 = vmax.f32 %v5276_v1, %v5278_v2 }
 0x127   :  { %v1635_v37 = vmax.f32 %v1599_v17, 0.0  ;;  %v1559_v59 = vmax.f32 %v1166_v10, %v1440_v56  ;;  %v1169_v22 = vmax.f32 %v6199_v21, %v4274_v33  ;;  %v1604_v11 = vadd.f32 %v5376_v48, %v1561_v0  ;;  %1674 = vst.msk [vmem:[#allocation2 + $0x38] sm:$0xff] %vm1666_vm1, %v1637_v16  ;;  %v4714_v17 = vld [vmem:[%s6139_s3 + $0x28] sm:$0xff]   ;;  %v4715_v21 = vld [vmem:[%s6139_s3 + $0x18] sm:$0xff]  }
 0x128   :  { %v1050_v35 = vpop.f32.mrf.mxu0  ;;  %v1443_v36 = vpop.f32.mrf.mxu1  ;;  %4344 = vmatpush3.bf16.msra.mxu0 %v4714_v17  ;;  %4368 = vmatpush3.bf16.msra.mxu1 %v4715_v21 }
 0x129   :  { %v1602_v23 = vadd.f32 %v5376_v48, %v1559_v59  ;;  %v1562_v9 = vmax.f32 %v1169_v22, %v4314_v57  ;;  %v1167_v29 = vmax.f32 %v774_v32, %v1050_v35  ;;  %v1640_v63 = vmax.f32 %v1604_v11, 0.0  ;;  %1672 = vst.msk [vmem:[#allocation2 + $0x28] sm:$0xff] %vm1666_vm1, %v1635_v37  ;;  %4345 = vmatprep.subr.bf16.mxu0 %v6198_v49 }
 0x12a   :  { %v5430_v41 = vpop.f32.mrf.mxu0  ;;  %v5432_v42 = vpop.f32.mrf.mxu1  ;;  %4369 = vmatprep.subr.bf16.mxu1 %v6198_v49 }
 0x12b   :  { %v1638_v24 = vmax.f32 %v1602_v23, 0.0  ;;  %v1560_v38 = vmax.f32 %v1167_v29, %v1443_v36  ;;  %1687 = vrot.lane.b32.xlu0 %v1640_v63, %s4800_s28  ;;  %v1605_v39 = vadd.f32 %v5376_v48, %v1562_v9 }
 0x12c   :  { %v1063_v25 = vpop.f32.mrf.mxu0  ;;  %v1456_v12 = vpop.f32.mrf.mxu1 }
 0x12d   :  { %v1603_v13 = vadd.f32 %v5376_v48, %v1560_v38  ;;  %v1170_v30 = vmax.f32 %v6200_v14, %v1063_v25  ;;  %v1641_v31 = vmax.f32 %v1605_v39, 0.0  ;;  %1675 = vst.msk [vmem:[#allocation2 + $0x40] sm:$0xff] %vm1666_vm1, %v1638_v24  ;;  %vm3191_vm1 = vcmask 255072  }
 0x12e   :  { %v5441_v15 = vpop.f32.mrf.mxu0  ;;  %v5443_v58 = vpop.f32.mrf.mxu1 }
 0x12f   :  { %v1563_v28 = vmax.f32 %v1170_v30, %v1456_v12  ;;  %1689 = vrot.lane.b32.xlu1 %v1641_v31, %s4800_s28  ;;  %v1639_v19 = vmax.f32 %v1603_v13, 0.0  ;;  %v6204_v13 = vmax.f32 %v5285_v5, %v5287_v6 }
 0x130   :  { %v1066_v20 = vpop.f32.mrf.mxu0  ;;  %v1459_v50 = vpop.f32.mrf.mxu1 }
 0x131   :  { %v1606_v56 = vadd.f32 %v5376_v48, %v1563_v28  ;;  %v1171_v46 = vmax.f32 %v778_v27, %v1066_v20  ;;  %1685 = vrot.lane.b32.xlu0 %v1639_v19, %s4800_s28  ;;  %v786_v27 = vmax.f32 %v5300_v45, %v5302_v3 }
 0x132   :  { %v4281_v47 = vpop.f32.mrf.mxu0  ;;  %v4321_v16 = vpop.f32.mrf.mxu1 }
 0x133   :  { %v1642_v0 = vmax.f32 %v1606_v56, 0.0  ;;  %v1564_v8 = vmax.f32 %v1171_v46, %v1459_v50  ;;  %v1176_v53 = vmax.f32 %v6201_v52, %v4281_v47  ;;  %v4717_v52 = vld [vmem:[%s6139_s3 + $0x10] sm:$0xff]  }
 0x134   :  { %v5456_v10 = vpop.f32.mrf.mxu0  ;;  %v5458_v32 = vpop.f32.mrf.mxu1  ;;  %4370 = vmatpush3.bf16.msra.mxu1 %v4717_v52  ;;  %v6218_v52 = vld [vmem:[#allocation9_spill] sm:$0xff] }
 0x135   :  { %v1607_v33 = vadd.f32 %v5376_v48, %v1564_v8  ;;  %v1569_v57 = vmax.f32 %v1176_v53, %v4321_v16  ;;  %1691 = vrot.lane.b32.xlu1 %v1642_v0, %s4800_s28  ;;  %v4716_v8 = vld [vmem:[%s6139_s3 + $0x20] sm:$0xff]   ;;  %4371 = vmatprep.subr.bf16.mxu1 %v6198_v49 }
 0x136   :  { %v4282_v37 = vpop.f32.mrf.mxu0  ;;  %v4322_v59 = vpop.f32.mrf.mxu1  ;;  %4346 = vmatpush3.bf16.msra.mxu0 %v4716_v8 }
 0x137   :  { %v1612_v54 = vadd.f32 %v5376_v48, %v1569_v57  ;;  %v1177_v22 = vmax.f32 %v6202_v55, %v4282_v37  ;;  %v1643_v11 = vmax.f32 %v1607_v33, 0.0  ;;  %v6205_v33 = vmax.f32 %v5316_v7, %v5318_v51  ;;  %4395 = vmatprep.subr.bf16.mxu0 %v6198_v49 }
 0x138   :  { %v5470_v35 = vpop.f32.mrf.mxu0  ;;  %v5472_v36 = vpop.f32.mrf.mxu1  ;;  %v6206_v7 = vmax.f32 %v5326_v26, %v5328_v4  ;;  %v4719_v26 = vld [vmem:[%s6139_s3] sm:$0xff]  }
 0x139   :  { %v1648_v23 = vmax.f32 %v1612_v54, 0.0  ;;  %v1570_v9 = vmax.f32 %v1177_v22, %v4322_v59  ;;  %1693 = vrot.lane.b32.xlu0 %v1643_v11, %s4800_s28  ;;  %v4718_v22 = vld [vmem:[%s6139_s3 + $0x8] sm:$0xff]  }
 0x13a   :  { %v4285_v29 = vpop.f32.mrf.mxu0  ;;  %v4325_v63 = vpop.f32.mrf.mxu1  ;;  %4372 = vmatpush3.bf16.msra.mxu1 %v4718_v22  ;;  %v6222_v22 = vld [vmem:[#allocation18_spill] sm:$0xff] }
 0x13b   :  { %v1613_v24 = vadd.f32 %v5376_v48, %v1570_v9  ;;  %v1180_v61 = vmax.f32 %v6203_v60, %v4285_v29  ;;  %1731 = vrot.lane.b32.xlu1 %v1648_v23, %s4801_s12  ;;  %v6207_v23 = vmax.f32 %v5232_v43, %v5234_v44  ;;  %4373 = vmatprep.subr.bf16.mxu1 %v6198_v49 }
 0x13c   :  { %v1095_v38 = vpop.f32.mrf.mxu0  ;;  %v1488_v39 = vpop.f32.mrf.mxu1  ;;  %v794_v43 = vmax.f32 %v5344_v62, %v5346_v34 }
 0x13d   :  { %v1649_v25 = vmax.f32 %v1613_v24, 0.0  ;;  %v1573_v12 = vmax.f32 %v1180_v61, %v4325_v63  ;;  %v1178_v14 = vmax.f32 %v6204_v13, %v1095_v38  ;;  %v1172_v9 = vmax.f32 %v6207_v23, %v5430_v41  ;;  %v6209_v41 = vld [vmem:[#allocation21_spill] sm:$0xff] }
 0x13e   :  { %v4286_v30 = vpop.f32.mrf.mxu0  ;;  %v5484_v31 = vpop.f32.mrf.mxu1  ;;  %v6208_v61 = vmax.f32 %v5332_v18, %v5334_v40  ;;  %v6212_v40 = vld [vmem:[#allocation7_spill] sm:$0xff]  ;;  %4374 = vmatpush3.bf16.msra.mxu1 %v4719_v26  ;;  %v6226_v26 = vld [vmem:[#allocation25_spill] sm:$0xff] }
 0x13f   :  { %v1616_v1 = vadd.f32 %v5376_v48, %v1573_v12  ;;  %v1571_v2 = vmax.f32 %v1178_v14, %v1488_v39  ;;  %1733 = vrot.lane.b32.xlu0 %v1649_v25, %s4801_s12  ;;  %v6210_v12 = vld [vmem:[#allocation22_spill] sm:$0xff]  ;;  %v1565_v18 = vmax.f32 %v1172_v9, %v5432_v42  ;;  %4423 = vmatprep.subr.bf16.mxu1 %v6198_v49  ;;  %v6224_v9 = vld [vmem:[#allocation12_spill] sm:$0xff] }
 0x140   :  { %v1098_v28 = vpop.f32.mrf.mxu0  ;;  %v1491_v19 = vpop.f32.mrf.mxu1  ;;  %v6211_v13 = vmax.f32 %v6209_v41, %v6210_v12  ;;  %v6229_v41 = vld [vmem:[#allocation20_spill] sm:$0xff]  ;;  %v6230_v12 = vld [vmem:[#allocation19_spill] sm:$0xff] }
 0x141   :  { %v1652_v20 = vmax.f32 %v1616_v1, 0.0  ;;  %v1614_v50 = vadd.f32 %v5376_v48, %v1571_v2  ;;  %v1179_v56 = vmax.f32 %v786_v27, %v1098_v28  ;;  %v6213_v27 = vld [vmem:[#allocation8_spill] sm:$0xff]  ;;  %v6215_v28 = vld [vmem:[#allocation13_spill] sm:$0xff] }
 0x142   :  { %v5491_v46 = vpop.f32.mrf.mxu0  ;;  %v5493_v5 = vpop.f32.mrf.mxu1  ;;  %v6214_v1 = vmax.f32 %v6212_v40, %v6213_v27  ;;  %v6231_v40 = vld [vmem:[#allocation30_spill] sm:$0xff]  ;;  %v6232_v27 = vld [vmem:[#allocation29_spill] sm:$0xff] }
 0x143   :  { %v1650_v6 = vmax.f32 %v1614_v50, 0.0  ;;  %v1572_v47 = vmax.f32 %v1179_v56, %v1491_v19  ;;  %1739 = vrot.lane.b32.xlu0 %v1652_v20, %s4801_s12  ;;  %v6216_v19 = vld [vmem:[#allocation14_spill] sm:$0xff] }
 0x144   :  { %v5496_v45 = vpop.f32.mrf.mxu0  ;;  %v5498_v3 = vpop.f32.mrf.mxu1  ;;  %v1173_v2 = vmax.f32 %v6214_v1, %v5441_v15  ;;  %v6217_v34 = vmax.f32 %v6215_v28, %v6216_v19  ;;  %v798_v1 = vmax.f32 %v6232_v27, %v6231_v40 }
 0x145   :  { %v1615_v16 = vadd.f32 %v5376_v48, %v1572_v47  ;;  %1735 = vrot.lane.b32.xlu1 %v1650_v6, %s4801_s12 }
 0x146   :  { %v4290_v17 = vpop.f32.mrf.mxu0  ;;  %v4330_v0 = vpop.f32.mrf.mxu1  ;;  %v1181_v62 = vmax.f32 %v6217_v34, %v4286_v30  ;;  %v1608_v30 = vadd.f32 %v5376_v48, %v1565_v18  ;;  %v1566_v8 = vmax.f32 %v1173_v2, %v5443_v58 }
 0x147   :  { %v1651_v53 = vmax.f32 %v1615_v16, 0.0  ;;  %v1185_v57 = vmax.f32 %v6205_v33, %v4290_v17 }
 0x148   :  { %v5511_v37 = vpop.f32.mrf.mxu0  ;;  %v5513_v59 = vpop.f32.mrf.mxu1 }
 0x149   :  { %v1578_v21 = vmax.f32 %v1185_v57, %v4330_v0  ;;  %1737 = vrot.lane.b32.xlu1 %v1651_v53, %s4801_s12  ;;  %v6219_v53 = vld [vmem:[#allocation10_spill] sm:$0xff] }
 0x14a   :  { %v4293_v54 = vpop.f32.mrf.mxu0  ;;  %v4333_v55 = vpop.f32.mrf.mxu1  ;;  %v6220_v33 = vmax.f32 %v6218_v52, %v6219_v53 }
 0x14b   :  { %v1621_v51 = vadd.f32 %v5376_v48, %v1578_v21  ;;  %v1188_v11 = vmax.f32 %v6206_v7, %v4293_v54  ;;  %v1574_v21 = vmax.f32 %v1181_v62, %v5484_v31  ;;  %v1644_v31 = vmax.f32 %v1608_v30, 0.0  ;;  %v6237_v30 = vld [vmem:[#allocation24_spill] sm:$0xff] }
 0x14c   :  { %v1127_v29 = vpop.f32.mrf.mxu0  ;;  %v1520_v63 = vpop.f32.mrf.mxu1  ;;  %v1174_v57 = vmax.f32 %v6220_v33, %v5456_v10 }
 0x14d   :  { %v1657_v24 = vmax.f32 %v1621_v51, 0.0  ;;  %v1581_v60 = vmax.f32 %v1188_v11, %v4333_v55  ;;  %v1186_v38 = vmax.f32 %v6208_v61, %v1127_v29  ;;  %v6221_v55 = vld [vmem:[#allocation17_spill] sm:$0xff]  ;;  %v6225_v29 = vld [vmem:[#allocation11_spill] sm:$0xff] }
 0x14e   :  { %v4294_v39 = vpop.f32.mrf.mxu0  ;;  %v4334_v25 = vpop.f32.mrf.mxu1  ;;  %v6223_v51 = vmax.f32 %v6221_v55, %v6222_v22  ;;  %v1567_v61 = vmax.f32 %v1174_v57, %v5458_v32  ;;  %v6240_v55 = vld [vmem:[#allocation28_spill] sm:$0xff] }
 0x14f   :  { %v1624_v44 = vadd.f32 %v5376_v48, %v1581_v60  ;;  %v1579_v4 = vmax.f32 %v1186_v38, %v1520_v63  ;;  %v1189_v14 = vmax.f32 %v6211_v13, %v4294_v39  ;;  %1777 = vrot.lane.b32.xlu0 %v1657_v24, %s4802_s20  ;;  %v782_v63 = vmax.f32 %v6225_v29, %v6224_v9 }
 0x150   :  { %v1130_v20 = vpop.f32.mrf.mxu0  ;;  %v1523_v50 = vpop.f32.mrf.mxu1  ;;  %v1182_v7 = vmax.f32 %v6223_v51, %v5496_v45  ;;  %v1609_v60 = vadd.f32 %v5376_v48, %v1566_v8  ;;  %v1617_v38 = vadd.f32 %v5376_v48, %v1574_v21  ;;  %v790_v13 = vmax.f32 %v6230_v12, %v6229_v41 }
 0x151   :  { %v1660_v56 = vmax.f32 %v1624_v44, 0.0  ;;  %v1622_v6 = vadd.f32 %v5376_v48, %v1579_v4  ;;  %v1582_v47 = vmax.f32 %v1189_v14, %v4334_v25  ;;  %v1187_v16 = vmax.f32 %v794_v43, %v1130_v20  ;;  %v6227_v43 = vld [vmem:[#allocation26_spill] sm:$0xff] }
 0x152   :  { %v4297_v42 = vpop.f32.mrf.mxu0  ;;  %v5553_v17 = vpop.f32.mrf.mxu1  ;;  %v1175_v45 = vmax.f32 %v782_v63, %v5470_v35  ;;  %v1575_v39 = vmax.f32 %v1182_v7, %v5498_v3  ;;  %v6228_v44 = vmax.f32 %v6226_v26, %v6227_v43  ;;  %v1645_v32 = vmax.f32 %v1609_v60, 0.0 }
 0x153   :  { %v1625_v0 = vadd.f32 %v5376_v48, %v1582_v47  ;;  %v1580_v15 = vmax.f32 %v1187_v16, %v1523_v50  ;;  %1783 = vrot.lane.b32.xlu1 %v1660_v56, %s4802_s20  ;;  %v1658_v11 = vmax.f32 %v1622_v6, 0.0  ;;  %v1610_v35 = vadd.f32 %v5376_v48, %v1567_v61  ;;  %v6233_v6 = vld [vmem:[#allocation15_spill] sm:$0xff]  ;;  %v6234_v47 = vld [vmem:[#allocation16_spill] sm:$0xff] }
 0x154   :  { %v1143_v54 = vpop.f32.mrf.mxu0  ;;  %v1536_v10 = vpop.f32.mrf.mxu1  ;;  %v1568_v3 = vmax.f32 %v1175_v45, %v5472_v36  ;;  %v1183_v2 = vmax.f32 %v790_v13, %v5511_v37  ;;  %v1653_v28 = vmax.f32 %v1617_v38, 0.0  ;;  %v1618_v19 = vadd.f32 %v5376_v48, %v1575_v39 }
 0x155   :  { %v1661_v23 = vmax.f32 %v1625_v0, 0.0  ;;  %v1623_v58 = vadd.f32 %v5376_v48, %v1580_v15  ;;  %v1190_v4 = vmax.f32 %v6228_v44, %v1143_v54  ;;  %v1646_v50 = vmax.f32 %v1610_v35, 0.0  ;;  %v6236_v15 = vld [vmem:[#allocation23_spill] sm:$0xff] }
 0x156   :  { %v4298_v24 = vpop.f32.mrf.mxu0  ;;  %v4338_v18 = vpop.f32.mrf.mxu1  ;;  %v1611_v56 = vadd.f32 %v5376_v48, %v1568_v3  ;;  %v6235_v16 = vmax.f32 %v6233_v6, %v6234_v47  ;;  %v1576_v37 = vmax.f32 %v1183_v2, %v5513_v59  ;;  %v1654_v0 = vmax.f32 %v1618_v19, 0.0  ;;  %v6239_v59 = vld [vmem:[#allocation27_spill] sm:$0xff] }
 0x157   :  { %1779 = vrot.lane.b32.xlu1 %v1658_v11, %s4802_s20  ;;  %1785 = vrot.lane.b32.xlu0 %v1661_v23, %s4802_s20  ;;  %v1659_v25 = vmax.f32 %v1623_v58, 0.0  ;;  %v1583_v34 = vmax.f32 %v1190_v4, %v1536_v10  ;;  %v6238_v8 = vmax.f32 %v6236_v15, %v6237_v30  ;;  %v6241_v22 = vmax.f32 %v6239_v59, %v6240_v55  ;;  %v4726_v55 = vld [vmem:[%s6139_s3 + $0x40] sm:$0xff]  }
 0x158   :  { %v1146_v14 = vpop.f32.mrf.mxu0  ;;  %v1539_v20 = vpop.f32.mrf.mxu1  ;;  %v1184_v36 = vmax.f32 %v6235_v16, %v5491_v46  ;;  %v1647_v57 = vmax.f32 %v1611_v56, 0.0  ;;  %v1619_v54 = vadd.f32 %v5376_v48, %v1576_v37  ;;  %v4724_v56 = vld [vmem:[%s6139_s3 + $0x70] sm:$0xff]  }
 0x159   :  { %v1191_v62 = vmax.f32 %v798_v1, %v1146_v14  ;;  %v1192_v52 = vmax.f32 %v6238_v8, %v4297_v42  ;;  %v1626_v53 = vadd.f32 %v5376_v48, %v1583_v34  ;;  %v1193_v51 = vmax.f32 %v6241_v22, %v4298_v24  ;;  %v4723_v1 = vld [vmem:[%s6139_s3 + $0x78] sm:$0xff]  }
 0x15a   :  { %v1577_v21 = vmax.f32 %v1184_v36, %v5493_v5  ;;  %v1655_v23 = vmax.f32 %v1619_v54, 0.0  ;;  %v4721_v36 = vld [vmem:[%s6139_s3 + $0x50] sm:$0xff]  }
 0x15b   :  { %1695 = vrot.lane.b32.xlu1 %v1644_v31, %s4800_s28  ;;  %1781 = vrot.lane.b32.xlu0 %v1659_v25, %s4802_s20  ;;  %v1584_v33 = vmax.f32 %v1191_v62, %v1539_v20  ;;  %v1585_v46 = vmax.f32 %v1192_v52, %v5553_v17  ;;  %v1662_v7 = vmax.f32 %v1626_v53, 0.0  ;;  %v1586_v58 = vmax.f32 %v1193_v51, %v4338_v18  ;;  %v4720_v20 = vld [vmem:[%s6139_s3 + $0x58] sm:$0xff]   ;;  %v4722_v53 = vld [vmem:[%s6139_s3 + $0x48] sm:$0xff]  }
 0x15c   :  { %v1620_v11 = vadd.f32 %v5376_v48, %v1577_v21 }
 0x15d   :  { %v1627_v42 = vadd.f32 %v5376_v48, %v1584_v33  ;;  %v1628_v5 = vadd.f32 %v5376_v48, %v1585_v46  ;;  %v1629_v63 = vadd.f32 %v5376_v48, %v1586_v58 }
 0x15e   :  { %v1656_v17 = vmax.f32 %v1620_v11, 0.0 }
 0x15f   :  { %1741 = vrot.lane.b32.xlu1 %v1653_v28, %s4801_s12  ;;  %1697 = vrot.lane.b32.xlu0 %v1645_v32, %s4800_s28  ;;  %v1663_v9 = vmax.f32 %v1627_v42, 0.0  ;;  %v1664_v29 = vmax.f32 %v1628_v5, 0.0  ;;  %v1665_v24 = vmax.f32 %v1629_v63, 0.0 }
 0x163   :  { %1699 = vrot.lane.b32.xlu1 %v1646_v50, %s4800_s28  ;;  %1743 = vrot.lane.b32.xlu0 %v1654_v0, %s4801_s12  ;;  %v4725_v0 = vld [vmem:[%s6139_s3 + $0x68] sm:$0xff]  }
 0x167   :  { %1701 = vrot.lane.b32.xlu0 %v1647_v57, %s4800_s28  ;;  %1787 = vrot.lane.b32.xlu1 %v1662_v7, %s4802_s20  ;;  %v4727_v57 = vld [vmem:[%s6139_s3 + $0x60] sm:$0xff]   ;;  %s4811_s28 = smov 80  }
 0x16b   :  { %1745 = vrot.lane.b32.xlu1 %v1655_v23, %s4801_s12  ;;  %1789 = vrot.lane.b32.xlu0 %v1663_v9, %s4802_s20 }
 0x16f   :  { %1791 = vrot.lane.b32.xlu1 %v1664_v29, %s4802_s20  ;;  %1747 = vrot.lane.b32.xlu0 %v1656_v17, %s4801_s12 }
 0x173   :  { %1793 = vrot.lane.b32.xlu0 %v1665_v24, %s4802_s20  ;;  %s4807_s20 = smov 20  }
 0x19d   :  { %v1688_v10 = vpop.permute.xlu0 %1687 }
 0x19e   :  { %1714 = vst.msk [vmem:[#allocation2 + $0x8] sm:$0xff] %vm1712_vm3, %v1688_v10 }
 0x1a1   :  { %v1690_v31 = vpop.permute.xlu1 %1689 }
 0x1a2   :  { %1715 = vst.msk [vmem:[#allocation2 + $0x10] sm:$0xff] %vm1712_vm3, %v1690_v31 }
 0x1a3   :  { %v1686_v60 = vpop.permute.xlu0 %1685 }
 0x1a4   :  { %1713 = vst.msk [vmem:[#allocation2] sm:$0xff] %vm1712_vm3, %v1686_v60 }
 0x1a7   :  { %v1692_v61 = vpop.permute.xlu1 %1691 }
 0x1a8   :  { %1716 = vst.msk [vmem:[#allocation2 + $0x18] sm:$0xff] %vm1712_vm3, %v1692_v61 }
 0x1ab   :  { %v1694_v48 = vpop.permute.xlu0 %1693 }
 0x1ac   :  { %1717 = vst.msk [vmem:[#allocation2 + $0x20] sm:$0xff] %vm1712_vm3, %v1694_v48 }
 0x1ad   :  { %v1732_v45 = vpop.permute.xlu1 %1731 }
 0x1ae   :  { %1759 = vst.msk [vmem:[#allocation2] sm:$0xff] %vm1758_vm4, %v1732_v45 }
 0x1b1   :  { %v1734_v38 = vpop.permute.xlu0 %1733 }
 0x1b2   :  { %1760 = vst.msk [vmem:[#allocation2 + $0x8] sm:$0xff] %vm1758_vm4, %v1734_v38 }
 0x1b5   :  { %v1740_v39 = vpop.permute.xlu0 %1739 }
 0x1b6   :  { %1763 = vst.msk [vmem:[#allocation2 + $0x20] sm:$0xff] %vm1758_vm4, %v1740_v39 }
 0x1b7   :  { %v1736_v25 = vpop.permute.xlu1 %1735 }
 0x1b8   :  { %1761 = vst.msk [vmem:[#allocation2 + $0x10] sm:$0xff] %vm1758_vm4, %v1736_v25  ;;  %v4731_v25 = vld [vmem:[%s6139_s3 + $0xb8] sm:$0xff]  }
 0x1bb   :  { %v1738_v26 = vpop.permute.xlu1 %1737 }
 0x1bc   :  { %1762 = vst.msk [vmem:[#allocation2 + $0x18] sm:$0xff] %vm1758_vm4, %v1738_v26 }
 0x1c1   :  { %v1778_v43 = vpop.permute.xlu0 %1777 }
 0x1c2   :  { %1805 = vst.msk [vmem:[#allocation2] sm:$0xff] %vm1804_vm5, %v1778_v43 }
 0x1c5   :  { %v1784_v44 = vpop.permute.xlu1 %1783 }
 0x1c6   :  { %1808 = vst.msk [vmem:[#allocation2 + $0x18] sm:$0xff] %vm1804_vm5, %v1784_v44  ;;  %v4728_v44 = vld [vmem:[%s6139_s3 + $0x98] sm:$0xff]  }
 0x1c9   :  { %v1780_v4 = vpop.permute.xlu1 %1779  ;;  %v1786_v41 = vpop.permute.xlu0 %1785  ;;  %v1814_v40 = vld [vmem:[#allocation2] sm:$0xff] }
 0x1ca   :  { %1806 = vst.msk [vmem:[#allocation2 + $0x8] sm:$0xff] %vm1804_vm5, %v1780_v4  ;;  %1809 = vst.msk [vmem:[#allocation2 + $0x20] sm:$0xff] %vm1804_vm5, %v1786_v41  ;;  %v4732_v41 = vld [vmem:[%s6139_s3 + $0xb0] sm:$0xff]  }
 0x1cd   :  { %v1696_v12 = vpop.permute.xlu1 %1695  ;;  %v1782_v13 = vpop.permute.xlu0 %1781  ;;  %v5647_v35 = vld [vmem:[#allocation2 + $0x18] sm:$0xff] }
 0x1ce   :  { %1718 = vst.msk [vmem:[#allocation2 + $0x28] sm:$0xff] %vm1712_vm3, %v1696_v12 }
 0x1cf   :  { %1807 = vst.msk [vmem:[#allocation2 + $0x10] sm:$0xff] %vm1804_vm5, %v1782_v13 }
 0x1d1   :  { %v1742_v14 = vpop.permute.xlu1 %1741  ;;  %v1698_v18 = vpop.permute.xlu0 %1697  ;;  %v1815_v27 = vld [vmem:[#allocation2 + $0x8] sm:$0xff]  ;;  %v5649_v3 = vld [vmem:[#allocation2 + $0x20] sm:$0xff] }
 0x1d2   :  { %1764 = vst.msk [vmem:[#allocation2 + $0x28] sm:$0xff] %vm1758_vm4, %v1742_v14  ;;  %v1823_v32 = vpack.c.bf16 %v1815_v27, %v1814_v40  ;;  %v2633_v2 = vpack.c.bf16 %v5649_v3, %v5647_v35  ;;  %v1836_v34 = vld [vmem:[#allocation2 + $0x2] sm:$0xff]  ;;  %v5683_v52 = vld [vmem:[#allocation2 + $0x1a] sm:$0xff]  ;;  %v4729_v14 = vld [vmem:[%s6139_s3 + $0x90] sm:$0xff]  }
 0x1d3   :  { %1719 = vst.msk [vmem:[#allocation2 + $0x30] sm:$0xff] %vm1712_vm3, %v1698_v18  ;;  %v2076_v43 = vld [vmem:[#allocation2 + $0x4] sm:$0xff]  ;;  %v2215_v13 = vld [vmem:[#allocation2 + $0x1c] sm:$0xff] }
 0x1d4   :  { %4376 = vmatmul.mubr.msk.bf16.vlgmr.msra.gmra.mxu1 %vm1883_vm6, %v1823_v32  ;;  %v4733_v40 = vld [vmem:[%s6139_s3 + $0xa8] sm:$0xff]   ;;  %v4735_v32 = vld [vmem:[%s6139_s3 + $0xa0] sm:$0xff]  }
 0x1d5   :  { %v1700_v28 = vpop.permute.xlu1 %1699  ;;  %v1744_v19 = vpop.permute.xlu0 %1743  ;;  %4379 = vmatprep.mubr.msk.bf16.mxu1 %vm4803_vm2, %v6198_v49  ;;  %4424 = vmatpush3.bf16.msra.mxu1 %v4723_v1  ;;  %v4730_v27 = vld [vmem:[%s6139_s3 + $0x88] sm:$0xff]  }
 0x1d6   :  { %v1837_v62 = vld [vmem:[#allocation2 + $0xa] sm:$0xff]  ;;  %1720 = vst.msk [vmem:[#allocation2 + $0x38] sm:$0xff] %vm1712_vm3, %v1700_v28  ;;  %4425 = vmatprep.subr.bf16.mxu1 %v6198_v49  ;;  %v1838_v15 = vld [vmem:[#allocation2 + $0x12] sm:$0xff] }
 0x1d7   :  { %1765 = vst.msk [vmem:[#allocation2 + $0x30] sm:$0xff] %vm1758_vm4, %v1744_v19  ;;  %v1845_v50 = vpack.c.bf16 %v1837_v62, %v1836_v34  ;;  %v1816_v6 = vld [vmem:[#allocation2 + $0x10] sm:$0xff]  ;;  %v1846_v33 = vpack.c.bf16 %v5683_v52, %v1838_v15  ;;  %v4734_v34 = vld [vmem:[%s6139_s3 + $0x80] sm:$0xff]   ;;  %v4739_v15 = vld [vmem:[%s6139_s3 + $0xf8] sm:$0xff]  }
 0x1d8   :  { %v5674_v37 = vpack.c.bf16 %v5647_v35, %v1816_v6  ;;  %v2213_v38 = vld [vmem:[#allocation2 + $0xc] sm:$0xff]  ;;  %v2214_v39 = vld [vmem:[#allocation2 + $0x14] sm:$0xff] }
 0x1d9   :  { %4348 = vmatmul.mubr.msk.bf16.vlgmr.msra.gmra.mxu0 %vm1883_vm6, %v1845_v50  ;;  %v1702_v47 = vpop.permute.xlu0 %1701  ;;  %v1788_v16 = vpop.permute.xlu1 %1787  ;;  %4426 = vmatpush3.bf16.msra.mxu1 %v4724_v56  ;;  %v2222_v26 = vpack.c.bf16 %v2214_v39, %v2213_v38  ;;  %v2085_v4 = vpack.c.bf16 %v2213_v38, %v2076_v43  ;;  %v2086_v1 = vpack.c.bf16 %v2215_v13, %v2214_v39  ;;  %v2494_v39 = vld [vmem:[#allocation2 + $0x48] sm:$0xff] }
 0x1da   :  { %4396 = vmatpush3.bf16.msra.mxu0 %v4720_v20  ;;  %4351 = vmatprep.mubr.msk.bf16.mxu0 %vm4803_vm2, %v6198_v49  ;;  %1721 = vst.msk [vmem:[#allocation2 + $0x40] sm:$0xff] %vm1712_vm3, %v1702_v47  ;;  %v2221_v47 = vld [vmem:[#allocation2 + $0x4c] sm:$0xff]  ;;  %vm3204_vm3 = vcmask 419072  }
 0x1db   :  { %1810 = vst.msk [vmem:[#allocation2 + $0x28] sm:$0xff] %vm1804_vm5, %v1788_v16  ;;  %4397 = vmatprep.subr.bf16.mxu0 %v6198_v49  ;;  %4427 = vmatprep.subr.bf16.mxu1 %v6198_v49  ;;  %v4746_v35 = vld [vmem:[%s6139_s3 + $0x108] sm:$0xff]  }
 0x1dc   :  { %4380 = vmatmul.mubr.msk.bf16.gmra.mxu1 %vm1883_vm6, %v5674_v37 }
 0x1dd   :  { %v1746_v30 = vpop.permute.xlu1 %1745  ;;  %v1790_v8 = vpop.permute.xlu0 %1789  ;;  %4383 = vmatprep.mubr.msk.bf16.mxu1 %vm4803_vm2, %v6198_v49  ;;  %4428 = vmatpush3.bf16.msra.mxu1 %v4725_v0 }
 0x1de   :  { %4398 = vmatpush3.bf16.msra.mxu0 %v4721_v36  ;;  %1766 = vst.msk [vmem:[#allocation2 + $0x38] sm:$0xff] %vm1758_vm4, %v1746_v30  ;;  %4429 = vmatprep.subr.bf16.mxu1 %v6198_v49  ;;  %v2226_v36 = vpack.c.bf16 %v2221_v47, %v2221_v47  ;;  %v2350_v30 = vld [vmem:[#allocation2 + $0xe] sm:$0xff] }
 0x1df   :  { %1811 = vst.msk [vmem:[#allocation2 + $0x30] sm:$0xff] %vm1804_vm5, %v1790_v8  ;;  %4399 = vmatprep.subr.bf16.mxu0 %v6198_v49  ;;  %v2351_v8 = vld [vmem:[#allocation2 + $0x16] sm:$0xff] }
 0x1e1   :  { %4352 = vmatmul.mubr.msk.bf16.gmra.mxu0 %vm1883_vm6, %v1846_v33  ;;  %v1792_v21 = vpop.permute.xlu1 %1791  ;;  %v1748_v54 = vpop.permute.xlu0 %1747  ;;  %4430 = vmatpush3.bf16.msra.mxu1 %v4727_v57  ;;  %v2359_v33 = vpack.c.bf16 %v2351_v8, %v2350_v30  ;;  %v4740_v57 = vld [vmem:[%s6139_s3 + $0xf0] sm:$0xff]  }
 0x1e2   :  { %v5699_v46 = vld [vmem:[#allocation2 + $0x28] sm:$0xff]  ;;  %4355 = vmatprep.mubr.msk.bf16.mxu0 %vm4803_vm2, %v6198_v49  ;;  %4400 = vmatpush3.bf16.msra.mxu0 %v4722_v53  ;;  %1812 = vst.msk [vmem:[#allocation2 + $0x38] sm:$0xff] %vm1804_vm5, %v1792_v21  ;;  %v4736_v53 = vld [vmem:[%s6139_s3 + $0xd8] sm:$0xff]  }
 0x1e3   :  { %v5703_v59 = vld [vmem:[#allocation2 + $0x22] sm:$0xff]  ;;  %1767 = vst.msk [vmem:[#allocation2 + $0x40] sm:$0xff] %vm1758_vm4, %v1748_v54  ;;  %v5712_v22 = vpack.c.bf16 %v5699_v46, %v5649_v3  ;;  %4401 = vmatprep.subr.bf16.mxu0 %v6198_v49  ;;  %4479 = vmatprep.subr.bf16.mxu1 %v6198_v49  ;;  %vm3210_vm4 = vcmask 583072  }
 0x1e4   :  { %v2770_v51 = vpack.c.bf16 %v5703_v59, %v5683_v52  ;;  %v2216_v12 = vld [vmem:[#allocation2 + $0x24] sm:$0xff]  ;;  %v4745_v52 = vld [vmem:[%s6139_s3 + $0x110] sm:$0xff]  }
 0x1e5   :  { %4384 = vmatmul.mubr.msk.bf16.gmra.mxu1 %vm1883_vm6, %v5712_v22  ;;  %v1794_v7 = vpop.permute.xlu0 %1793  ;;  %v5793_v18 = vpack.c.bf16 %v2216_v12, %v2215_v13  ;;  %v4741_v21 = vld [vmem:[%s6139_s3 + $0xe8] sm:$0xff]   ;;  %v4744_v13 = vld [vmem:[%s6139_s3 + $0x118] sm:$0xff]   ;;  %v4747_v3 = vld [vmem:[%s6139_s3 + $0x100] sm:$0xff]  }
 0x1e6   :  { %v5720_v42 = vld [vmem:[#allocation2 + $0x2a] sm:$0xff]  ;;  %4387 = vmatprep.mubr.msk.bf16.mxu1 %vm4803_vm2, %v6198_v49  ;;  %4402 = vmatpush3.bf16.msra.mxu0 %v4726_v55  ;;  %1813 = vst.msk [vmem:[#allocation2 + $0x40] sm:$0xff] %vm1804_vm5, %v1794_v7  ;;  %v2352_v55 = vld [vmem:[#allocation2 + $0x1e] sm:$0xff]  ;;  %vm3223_vm5 = vcmask 747072  }
 0x1e7   :  { %v5724_v11 = vld [vmem:[#allocation2 + $0x30] sm:$0xff]  ;;  %v1847_v23 = vpack.c.bf16 %v5720_v42, %v5703_v59  ;;  %4451 = vmatprep.subr.bf16.mxu0 %v6198_v49  ;;  %v2353_v54 = vld [vmem:[#allocation2 + $0x26] sm:$0xff] }
 0x1e8   :  { %v2634_v5 = vpack.c.bf16 %v5724_v11, %v5699_v46  ;;  %v2217_v19 = vld [vmem:[#allocation2 + $0x2c] sm:$0xff]  ;;  %v2632_v46 = vld [vmem:[#allocation2 + $0x58] sm:$0xff] }
 0x1e9   :  { %4356 = vmatmul.mubr.msk.bf16.gmra.mxu0 %vm1883_vm6, %v1847_v23  ;;  %v5733_v58 = vld [vmem:[#allocation2 + $0x38] sm:$0xff]  ;;  %v2087_v20 = vpack.c.bf16 %v2217_v19, %v2216_v12  ;;  %v4738_v7 = vld [vmem:[%s6139_s3 + $0xc8] sm:$0xff]   ;;  %v2360_v23 = vpack.c.bf16 %v2353_v54, %v2352_v55  ;;  %v2637_v59 = vpack.c.bf16 %v2632_v46, %v2632_v46 }
 0x1ea   :  { %4359 = vmatprep.mubr.msk.bf16.mxu0 %vm4803_vm2, %v6198_v49  ;;  %v5737_v9 = vld [vmem:[#allocation2 + $0x32] sm:$0xff]  ;;  %v5741_v17 = vpack.c.bf16 %v5733_v58, %v5724_v11 }
 0x1eb   :  { %v2771_v29 = vpack.c.bf16 %v5737_v9, %v5720_v42  ;;  %v2218_v28 = vld [vmem:[#allocation2 + $0x34] sm:$0xff] }
 0x1ec   :  { %v5818_v62 = vpack.c.bf16 %v2218_v28, %v2217_v19 }
 0x1ed   :  { %4388 = vmatmul.mubr.msk.bf16.gmra.mxu1 %vm1883_vm6, %v5741_v17  ;;  %v5747_v63 = vld [vmem:[#allocation2 + $0x3a] sm:$0xff]  ;;  %v5753_v10 = vld [vmem:[#allocation2 + $0x42] sm:$0xff] }
 0x1ee   :  { %4391 = vmatprep.mubr.msk.bf16.mxu1 %vm4803_vm2, %v6198_v49  ;;  %v5751_v24 = vld [vmem:[#allocation2 + $0x40] sm:$0xff]  ;;  %v1848_v31 = vpack.c.bf16 %v5747_v63, %v5737_v9  ;;  %v2772_v60 = vpack.c.bf16 %v5753_v10, %v5747_v63  ;;  %v1849_v45 = vpack.c.bf16 %v5753_v10, %v5753_v10 }
 0x1ef   :  { %v2635_v61 = vpack.c.bf16 %v5751_v24, %v5733_v58  ;;  %v1827_v48 = vpack.c.bf16 %v5751_v24, %v5751_v24  ;;  %v2219_v50 = vld [vmem:[#allocation2 + $0x3c] sm:$0xff]  ;;  %v2220_v56 = vld [vmem:[#allocation2 + $0x44] sm:$0xff] }
 0x1f0   :  { %v5830_v6 = vpack.c.bf16 %v2220_v56, %v2219_v50  ;;  %v2088_v16 = vpack.c.bf16 %v2219_v50, %v2218_v28  ;;  %v2089_v0 = vpack.c.bf16 %v2220_v56, %v2220_v56  ;;  %v2357_v43 = vld [vmem:[#allocation2 + $0x46] sm:$0xff] }
 0x1f1   :  { %4360 = vmatmul.mubr.msk.bf16.gmra.mxu0 %vm1883_vm6, %v1848_v31  ;;  %v4743_v31 = vld [vmem:[%s6139_s3 + $0xe0] sm:$0xff]  }
 0x1f2   :  { %4363 = vmatprep.mubr.msk.bf16.mxu0 %vm4803_vm2, %v6198_v49 }
 0x1f5   :  { %4392 = vmatmul.mubr.msk.bf16.gmra.mxu1 %vm1883_vm6, %v1827_v48  ;;  %v2355_v48 = vld [vmem:[#allocation2 + $0x36] sm:$0xff] }
 0x1f6   :  { %4431 = vmatprep.mubr.msk.bf16.mxu1 %vm4803_vm2, %v6198_v49 }
 0x1f9   :  { %4364 = vmatmul.mubr.msk.bf16.gmra.mxu0 %vm1883_vm6, %v1849_v45  ;;  %v2354_v45 = vld [vmem:[#allocation2 + $0x2e] sm:$0xff] }
 0x1fa   :  { %4403 = vmatprep.mubr.msk.bf16.mxu0 %vm4803_vm2, %v6198_v49  ;;  %v2361_v38 = vpack.c.bf16 %v2355_v48, %v2354_v45 }
 0x1fd   :  { %4432 = vmatmul.mubr.msk.bf16.vlgmr.msra.gmra.mxu1 %vm1883_vm6, %v2222_v26  ;;  %v2356_v26 = vld [vmem:[#allocation2 + $0x3e] sm:$0xff] }
 0x1fe   :  { %4435 = vmatprep.mubr.msk.bf16.mxu1 %vm4803_vm2, %v6198_v49  ;;  %4480 = vmatpush3.bf16.msra.mxu1 %v4731_v25  ;;  %v2499_v25 = vpack.c.bf16 %v2494_v39, %v5751_v24 }
 0x1ff   :  { %4481 = vmatprep.subr.bf16.mxu1 %v6198_v49 }
 0x201   :  { %4404 = vmatmul.mubr.msk.bf16.vlgmr.msra.gmra.mxu0 %vm1883_vm6, %v2085_v4 }
 0x202   :  { %4452 = vmatpush3.bf16.msra.mxu0 %v4728_v44  ;;  %4407 = vmatprep.mubr.msk.bf16.mxu0 %vm4803_vm2, %v6198_v49  ;;  %v2362_v44 = vpack.c.bf16 %v2357_v43, %v2356_v26 }
 0x203   :  { %4453 = vmatprep.subr.bf16.mxu0 %v6198_v49  ;;  %4482 = vmatpush3.bf16.msra.mxu1 %v4732_v41  ;;  %v2358_v41 = vld [vmem:[#allocation2 + $0x4e] sm:$0xff] }
 0x204   :  { %4483 = vmatprep.subr.bf16.mxu1 %v6198_v49  ;;  %v2363_v12 = vpack.c.bf16 %v2358_v41, %v2358_v41 }
 0x205   :  { %4436 = vmatmul.mubr.msk.bf16.gmra.mxu1 %vm1883_vm6, %v5793_v18 }
 0x206   :  { %4439 = vmatprep.mubr.msk.bf16.mxu1 %vm4803_vm2, %v6198_v49  ;;  %4454 = vmatpush3.bf16.msra.mxu0 %v4729_v14 }
 0x207   :  { %4455 = vmatprep.subr.bf16.mxu0 %v6198_v49  ;;  %4484 = vmatpush3.bf16.msra.mxu1 %v4733_v40 }
 0x208   :  { %4485 = vmatprep.subr.bf16.mxu1 %v6198_v49 }
 0x209   :  { %4408 = vmatmul.mubr.msk.bf16.gmra.mxu0 %vm1883_vm6, %v2086_v1 }
 0x20a   :  { %4411 = vmatprep.mubr.msk.bf16.mxu0 %vm4803_vm2, %v6198_v49  ;;  %4456 = vmatpush3.bf16.msra.mxu0 %v4730_v27 }
 0x20b   :  { %4457 = vmatprep.subr.bf16.mxu0 %v6198_v49  ;;  %4486 = vmatpush3.bf16.msra.mxu1 %v4735_v32 }
 0x20c   :  { %4535 = vmatprep.subr.bf16.mxu1 %v6198_v49 }
 0x20d   :  { %4440 = vmatmul.mubr.msk.bf16.gmra.mxu1 %vm1883_vm6, %v5818_v62 }
 0x20e   :  { %4443 = vmatprep.mubr.msk.bf16.mxu1 %vm4803_vm2, %v6198_v49  ;;  %4458 = vmatpush3.bf16.msra.mxu0 %v4734_v34 }
 0x20f   :  { %4507 = vmatprep.subr.bf16.mxu0 %v6198_v49 }
 0x211   :  { %4412 = vmatmul.mubr.msk.bf16.gmra.mxu0 %vm1883_vm6, %v2087_v20 }
 0x212   :  { %4415 = vmatprep.mubr.msk.bf16.mxu0 %vm4803_vm2, %v6198_v49 }
 0x215   :  { %4444 = vmatmul.mubr.msk.bf16.gmra.mxu1 %vm1883_vm6, %v5830_v6 }
 0x216   :  { %4447 = vmatprep.mubr.msk.bf16.mxu1 %vm4803_vm2, %v6198_v49 }
 0x219   :  { %4416 = vmatmul.mubr.msk.bf16.gmra.mxu0 %vm1883_vm6, %v2088_v16 }
 0x21a   :  { %4419 = vmatprep.mubr.msk.bf16.mxu0 %vm4803_vm2, %v6198_v49 }
 0x21d   :  { %4448 = vmatmul.mubr.msk.bf16.gmra.mxu1 %vm1883_vm6, %v2226_v36 }
 0x21e   :  { %4487 = vmatprep.mubr.msk.bf16.mxu1 %vm4803_vm2, %v6198_v49 }
 0x221   :  { %4420 = vmatmul.mubr.msk.bf16.gmra.mxu0 %vm1883_vm6, %v2089_v0 }
 0x222   :  { %4459 = vmatprep.mubr.msk.bf16.mxu0 %vm4803_vm2, %v6198_v49 }
 0x225   :  { %4488 = vmatmul.mubr.msk.bf16.vlgmr.msra.gmra.mxu1 %vm1883_vm6, %v5674_v37  ;;  %v4737_v37 = vld [vmem:[%s6139_s3 + $0xd0] sm:$0xff]  }
 0x226   :  { %4491 = vmatprep.mubr.msk.bf16.mxu1 %vm4803_vm2, %v6198_v49  ;;  %4536 = vmatpush3.bf16.msra.mxu1 %v4739_v15 }
 0x227   :  { %4537 = vmatprep.subr.bf16.mxu1 %v6198_v49 }
 0x229   :  { %4460 = vmatmul.mubr.msk.bf16.vlgmr.msra.gmra.mxu0 %vm1883_vm6, %v2359_v33 }
 0x22a   :  { %4508 = vmatpush3.bf16.msra.mxu0 %v4736_v53  ;;  %4463 = vmatprep.mubr.msk.bf16.mxu0 %vm4803_vm2, %v6198_v49 }
 0x22b   :  { %4509 = vmatprep.subr.bf16.mxu0 %v6198_v49  ;;  %4538 = vmatpush3.bf16.msra.mxu1 %v4740_v57 }
 0x22c   :  { %4539 = vmatprep.subr.bf16.mxu1 %v6198_v49 }
 0x22d   :  { %4492 = vmatmul.mubr.msk.bf16.gmra.mxu1 %vm1883_vm6, %v5712_v22  ;;  %v4742_v22 = vld [vmem:[%s6139_s3 + $0xc0] sm:$0xff]   ;;  %s4804_s3 = smov 96  }
 0x22e   :  { %4495 = vmatprep.mubr.msk.bf16.mxu1 %vm4803_vm2, %v6198_v49  ;;  %4510 = vmatpush3.bf16.msra.mxu0 %v4737_v37 }
 0x22f   :  { %4511 = vmatprep.subr.bf16.mxu0 %v6198_v49  ;;  %4540 = vmatpush3.bf16.msra.mxu1 %v4741_v21 }
 0x230   :  { %4541 = vmatprep.subr.bf16.mxu1 %v6198_v49 }
 0x231   :  { %4464 = vmatmul.mubr.msk.bf16.gmra.mxu0 %vm1883_vm6, %v2360_v23 }
 0x232   :  { %4467 = vmatprep.mubr.msk.bf16.mxu0 %vm4803_vm2, %v6198_v49  ;;  %4512 = vmatpush3.bf16.msra.mxu0 %v4738_v7 }
 0x233   :  { %4513 = vmatprep.subr.bf16.mxu0 %v6198_v49  ;;  %4542 = vmatpush3.bf16.msra.mxu1 %v4743_v31 }
 0x235   :  { %4496 = vmatmul.mubr.msk.bf16.gmra.mxu1 %vm1883_vm6, %v5741_v17  ;;  %v2495_v17 = vld [vmem:[#allocation2 + $0x50] sm:$0xff] }
 0x236   :  { %4499 = vmatprep.mubr.msk.bf16.mxu1 %vm4803_vm2, %v6198_v49  ;;  %4514 = vmatpush3.bf16.msra.mxu0 %v4742_v22  ;;  %v2500_v4 = vpack.c.bf16 %v2495_v17, %v2495_v17 }
 0x237   :  { %4563 = vmatprep.subr.bf16.mxu0 %v6198_v49 }
 0x239   :  { %4468 = vmatmul.mubr.msk.bf16.gmra.mxu0 %vm1883_vm6, %v2361_v38 }
 0x23a   :  { %4471 = vmatprep.mubr.msk.bf16.mxu0 %vm4803_vm2, %v6198_v49 }
 0x23d   :  { %4500 = vmatmul.mubr.msk.bf16.gmra.mxu1 %vm1883_vm6, %v2499_v25 }
 0x23e   :  { %4503 = vmatprep.mubr.msk.bf16.mxu1 %vm4803_vm2, %v6198_v49 }
 0x241   :  { %4472 = vmatmul.mubr.msk.bf16.gmra.mxu0 %vm1883_vm6, %v2362_v44 }
 0x242   :  { %4475 = vmatprep.mubr.msk.bf16.mxu0 %vm4803_vm2, %v6198_v49 }
 0x245   :  { %4504 = vmatmul.mubr.msk.bf16.gmra.mxu1 %vm1883_vm6, %v2500_v4 }
 0x246   :  { %4543 = vmatprep.mubr.msk.bf16.mxu1 %vm4803_vm2, %v6198_v49 }
 0x249   :  { %4476 = vmatmul.mubr.msk.bf16.gmra.mxu0 %vm1883_vm6, %v2363_v12 }
 0x24a   :  { %4515 = vmatprep.mubr.msk.bf16.mxu0 %vm4803_vm2, %v6198_v49 }
 0x24d   :  { %4544 = vmatmul.mubr.msk.bf16.vlgmr.msra.gmra.mxu1 %vm1883_vm6, %v2770_v51 }
 0x24e   :  { %4547 = vmatprep.mubr.msk.bf16.mxu1 %vm4803_vm2, %v6198_v49 }
 0x251   :  { %4516 = vmatmul.mubr.msk.bf16.vlgmr.msra.gmra.mxu0 %vm1883_vm6, %v2633_v2  ;;  %v2636_v2 = vpack.c.bf16 %v2495_v17, %v2494_v39 }
 0x252   :  { %4564 = vmatpush3.bf16.msra.mxu0 %v4744_v13  ;;  %4519 = vmatprep.mubr.msk.bf16.mxu0 %vm4803_vm2, %v6198_v49 }
 0x253   :  { %4565 = vmatprep.subr.bf16.mxu0 %v6198_v49 }
 0x255   :  { %4548 = vmatmul.mubr.msk.bf16.gmra.mxu1 %vm1883_vm6, %v2771_v29 }
 0x256   :  { %4551 = vmatprep.mubr.msk.bf16.mxu1 %vm4803_vm2, %v6198_v49  ;;  %4566 = vmatpush3.bf16.msra.mxu0 %v4745_v52 }
 0x257   :  { %4567 = vmatprep.subr.bf16.mxu0 %v6198_v49 }
 0x259   :  { %4520 = vmatmul.mubr.msk.bf16.gmra.mxu0 %vm1883_vm6, %v2634_v5 }
 0x25a   :  { %4523 = vmatprep.mubr.msk.bf16.mxu0 %vm4803_vm2, %v6198_v49  ;;  %4568 = vmatpush3.bf16.msra.mxu0 %v4746_v35 }
 0x25b   :  { %4569 = vmatprep.subr.bf16.mxu0 %v6198_v49 }
 0x25d   :  { %4552 = vmatmul.mubr.msk.bf16.gmra.mxu1 %vm1883_vm6, %v2772_v60 }
 0x25e   :  { %4570 = vmatpush3.bf16.msra.mxu0 %v4747_v3  ;;  %4555 = vmatprep.mubr.msk.bf16.mxu1 %vm4803_vm2, %v6198_v49 }
 0x261   :  { %4524 = vmatmul.mubr.msk.bf16.gmra.mxu0 %vm1883_vm6, %v2635_v61 }
 0x262   :  { %4527 = vmatprep.mubr.msk.bf16.mxu0 %vm4803_vm2, %v6198_v49 }
 0x269   :  { %4528 = vmatmul.mubr.msk.bf16.gmra.mxu0 %vm1883_vm6, %v2636_v2 }
 0x26a   :  { %4531 = vmatprep.mubr.msk.bf16.mxu0 %vm4803_vm2, %v6198_v49 }
 0x271   :  { %4532 = vmatmul.mubr.msk.bf16.gmra.mxu0 %vm1883_vm6, %v2637_v59 }
 0x272   :  { %4571 = vmatprep.mubr.msk.bf16.mxu0 %vm4803_vm2, %v6198_v49 }
 0x279   :  { %4572 = vmatmul.mubr.msk.bf16.vlgmr.msra.gmra.mxu0 %vm1883_vm6, %v5793_v18 }
 0x27a   :  { %4575 = vmatprep.mubr.msk.bf16.mxu0 %vm4803_vm2, %v6198_v49 }
 0x281   :  { %4576 = vmatmul.mubr.msk.bf16.gmra.mxu0 %vm1883_vm6, %v5818_v62 }
 0x282   :  { %4579 = vmatprep.mubr.msk.bf16.mxu0 %vm4803_vm2, %v6198_v49 }
 0x289   :  { %4580 = vmatmul.mubr.msk.bf16.gmra.mxu0 %vm1883_vm6, %v5830_v6 }
 0x28a   :  { %4583 = vmatprep.mubr.msk.bf16.mxu0 %vm4803_vm2, %v6198_v49 }
 0x294   :  { %v2041_v51 = vpop.f32.mrf.mxu1 }
 0x296   :  { %v4377_v42 = vpop.f32.mrf.mxu1 }
 0x298   :  { %v2044_v5 = vpop.f32.mrf.mxu1 }
 0x299   :  { %v1933_v11 = vpop.f32.mrf.mxu0 }
 0x29a   :  { %v2042_v58 = vadd.f32 %v2041_v51, %v1933_v11  ;;  %v4378_v29 = vpop.f32.mrf.mxu1 }
 0x29b   :  { %v4349_v9 = vpop.f32.mrf.mxu0 }
 0x29c   :  { %v2049_v24 = vpop.f32.mrf.mxu1 }
 0x29d   :  { %v1936_v63 = vpop.f32.mrf.mxu0 }
 0x29e   :  { %v2045_v10 = vadd.f32 %v2044_v5, %v1936_v63  ;;  %v4381_v61 = vpop.f32.mrf.mxu1 }
 0x29f   :  { %v4350_v60 = vpop.f32.mrf.mxu0 }
 0x2a0   :  { %v2052_v18 = vpop.f32.mrf.mxu1 }
 0x2a1   :  { %v1941_v14 = vpop.f32.mrf.mxu0 }
 0x2a2   :  { %v2050_v40 = vadd.f32 %v2049_v24, %v1941_v14  ;;  %v4382_v1 = vpop.f32.mrf.mxu1 }
 0x2a3   :  { %v4353_v27 = vpop.f32.mrf.mxu0 }
 0x2a5   :  { %v1944_v32 = vpop.f32.mrf.mxu0  ;;  %v2057_v28 = vpop.f32.mrf.mxu1 }
 0x2a6   :  { %v2053_v19 = vadd.f32 %v2052_v18, %v1944_v32 }
 0x2a7   :  { %v4354_v34 = vpop.f32.mrf.mxu0  ;;  %v4385_v62 = vpop.f32.mrf.mxu1 }
 0x2a9   :  { %v1949_v20 = vpop.f32.mrf.mxu0  ;;  %v2060_v50 = vpop.f32.mrf.mxu1 }
 0x2aa   :  { %v2058_v56 = vadd.f32 %v2057_v28, %v1949_v20 }
 0x2ab   :  { %v4357_v6 = vpop.f32.mrf.mxu0  ;;  %v4386_v47 = vpop.f32.mrf.mxu1 }
 0x2ad   :  { %v1952_v16 = vpop.f32.mrf.mxu0  ;;  %v2065_v36 = vpop.f32.mrf.mxu1 }
 0x2ae   :  { %v2061_v0 = vadd.f32 %v2060_v50, %v1952_v16 }
 0x2af   :  { %v4358_v15 = vpop.f32.mrf.mxu0  ;;  %v4389_v30 = vpop.f32.mrf.mxu1 }
 0x2b1   :  { %v1957_v8 = vpop.f32.mrf.mxu0  ;;  %v2067_v53 = vpop.f32.mrf.mxu1 }
 0x2b3   :  { %v4361_v33 = vpop.f32.mrf.mxu0  ;;  %v4390_v57 = vpop.f32.mrf.mxu1 }
 0x2b5   :  { %v1959_v37 = vpop.f32.mrf.mxu0  ;;  %v2071_v21 = vpop.f32.mrf.mxu1 }
 0x2b7   :  { %v4362_v54 = vpop.f32.mrf.mxu0  ;;  %v4393_v55 = vpop.f32.mrf.mxu1 }
 0x2b9   :  { %v1963_v7 = vpop.f32.mrf.mxu0  ;;  %v2073_v23 = vpop.f32.mrf.mxu1 }
 0x2bb   :  { %v4365_v31 = vpop.f32.mrf.mxu0  ;;  %v4394_v22 = vpop.f32.mrf.mxu1 }
 0x2bd   :  { %v1965_v48 = vpop.f32.mrf.mxu0  ;;  %v2309_v45 = vpop.f32.mrf.mxu1 }
 0x2bf   :  { %v4366_v38 = vpop.f32.mrf.mxu0  ;;  %v4433_v39 = vpop.f32.mrf.mxu1 }
 0x2c1   :  { %v2172_v25 = vpop.f32.mrf.mxu0  ;;  %v2312_v26 = vpop.f32.mrf.mxu1 }
 0x2c2   :  { %v2207_v43 = vadd.f32 %v2172_v25, %v2042_v58 }
 0x2c3   :  { %v4405_v17 = vpop.f32.mrf.mxu0  ;;  %v4434_v44 = vpop.f32.mrf.mxu1 }
 0x2c4   :  { %v2344_v4 = vadd.f32 %v2309_v45, %v2207_v43 }
 0x2c5   :  { %v2175_v41 = vpop.f32.mrf.mxu0  ;;  %v2317_v12 = vpop.f32.mrf.mxu1 }
 0x2c6   :  { %v2208_v13 = vadd.f32 %v2175_v41, %v2045_v10 }
 0x2c7   :  { %v4406_v52 = vpop.f32.mrf.mxu0  ;;  %v4437_v35 = vpop.f32.mrf.mxu1 }
 0x2c8   :  { %v2345_v3 = vadd.f32 %v2312_v26, %v2208_v13 }
 0x2c9   :  { %v2180_v2 = vpop.f32.mrf.mxu0  ;;  %v2320_v46 = vpop.f32.mrf.mxu1 }
 0x2ca   :  { %v2209_v59 = vadd.f32 %v2180_v2, %v2050_v40 }
 0x2cb   :  { %v4409_v51 = vpop.f32.mrf.mxu0  ;;  %v4438_v42 = vpop.f32.mrf.mxu1 }
 0x2cc   :  { %v2346_v11 = vadd.f32 %v2317_v12, %v2209_v59 }
 0x2cd   :  { %v2183_v5 = vpop.f32.mrf.mxu0  ;;  %v2325_v9 = vpop.f32.mrf.mxu1 }
 0x2ce   :  { %v2210_v29 = vadd.f32 %v2183_v5, %v2053_v19 }
 0x2cf   :  { %v4410_v63 = vpop.f32.mrf.mxu0  ;;  %v4441_v58 = vpop.f32.mrf.mxu1 }
 0x2d0   :  { %v2347_v24 = vadd.f32 %v2320_v46, %v2210_v29 }
 0x2d1   :  { %v2188_v60 = vpop.f32.mrf.mxu0  ;;  %v2328_v61 = vpop.f32.mrf.mxu1 }
 0x2d2   :  { %v2211_v14 = vadd.f32 %v2188_v60, %v2058_v56 }
 0x2d3   :  { %v4413_v18 = vpop.f32.mrf.mxu0  ;;  %v4442_v10 = vpop.f32.mrf.mxu1 }
 0x2d4   :  { %v2348_v27 = vadd.f32 %v2325_v9, %v2211_v14 }
 0x2d5   :  { %v2191_v1 = vpop.f32.mrf.mxu0  ;;  %v2333_v32 = vpop.f32.mrf.mxu1 }
 0x2d6   :  { %v2212_v28 = vadd.f32 %v2191_v1, %v2061_v0 }
 0x2d7   :  { %v4414_v34 = vpop.f32.mrf.mxu0  ;;  %v4445_v40 = vpop.f32.mrf.mxu1 }
 0x2d8   :  { %v2349_v62 = vadd.f32 %v2328_v61, %v2212_v28 }
 0x2d9   :  { %v2196_v20 = vpop.f32.mrf.mxu0  ;;  %v2335_v50 = vpop.f32.mrf.mxu1 }
 0x2db   :  { %v4417_v6 = vpop.f32.mrf.mxu0  ;;  %v4446_v47 = vpop.f32.mrf.mxu1 }
 0x2dd   :  { %v2198_v19 = vpop.f32.mrf.mxu0  ;;  %v2339_v16 = vpop.f32.mrf.mxu1 }
 0x2df   :  { %v4418_v36 = vpop.f32.mrf.mxu0  ;;  %v4449_v15 = vpop.f32.mrf.mxu1 }
 0x2e1   :  { %v2202_v30 = vpop.f32.mrf.mxu0  ;;  %v2341_v8 = vpop.f32.mrf.mxu1 }
 0x2e3   :  { %v4421_v56 = vpop.f32.mrf.mxu0  ;;  %v4450_v53 = vpop.f32.mrf.mxu1 }
 0x2e5   :  { %v2204_v33 = vpop.f32.mrf.mxu0  ;;  %v2583_v57 = vpop.f32.mrf.mxu1 }
 0x2e7   :  { %v4422_v37 = vpop.f32.mrf.mxu0  ;;  %v4489_v21 = vpop.f32.mrf.mxu1 }
 0x2e9   :  { %v2446_v0 = vpop.f32.mrf.mxu0  ;;  %v2586_v54 = vpop.f32.mrf.mxu1 }
 0x2ea   :  { %v2481_v55 = vadd.f32 %v2446_v0, %v2344_v4 }
 0x2eb   :  { %v4461_v7 = vpop.f32.mrf.mxu0  ;;  %v4490_v23 = vpop.f32.mrf.mxu1 }
 0x2ec   :  { %v5979_v31 = vadd.f32 %v2583_v57, %v2481_v55 }
 0x2ed   :  { %v2449_v22 = vpop.f32.mrf.mxu0  ;;  %v2591_v48 = vpop.f32.mrf.mxu1 }
 0x2ee   :  { %v2482_v45 = vadd.f32 %v2449_v22, %v2345_v3 }
 0x2ef   :  { %v4462_v38 = vpop.f32.mrf.mxu0  ;;  %v4493_v39 = vpop.f32.mrf.mxu1 }
 0x2f0   :  { %v5981_v25 = vadd.f32 %v2586_v54, %v2482_v45 }
 0x2f1   :  { %v2454_v26 = vpop.f32.mrf.mxu0  ;;  %v2594_v43 = vpop.f32.mrf.mxu1 }
 0x2f2   :  { %v2483_v17 = vadd.f32 %v2454_v26, %v2346_v11 }
 0x2f3   :  { %v4465_v44 = vpop.f32.mrf.mxu0  ;;  %v4494_v41 = vpop.f32.mrf.mxu1 }
 0x2f4   :  { %v5983_v12 = vadd.f32 %v2591_v48, %v2483_v17 }
 0x2f5   :  { %v2457_v13 = vpop.f32.mrf.mxu0  ;;  %v2599_v4 = vpop.f32.mrf.mxu1 }
 0x2f6   :  { %v2484_v52 = vadd.f32 %v2457_v13, %v2347_v24 }
 0x2f7   :  { %v4466_v35 = vpop.f32.mrf.mxu0  ;;  %v4497_v2 = vpop.f32.mrf.mxu1 }
 0x2f8   :  { %v5985_v46 = vadd.f32 %v2594_v43, %v2484_v52 }
 0x2f9   :  { %v2462_v59 = vpop.f32.mrf.mxu0  ;;  %v2602_v3 = vpop.f32.mrf.mxu1 }
 0x2fa   :  { %v2485_v51 = vadd.f32 %v2462_v59, %v2348_v27 }
 0x2fb   :  { %v4469_v42 = vpop.f32.mrf.mxu0  ;;  %v4498_v5 = vpop.f32.mrf.mxu1 }
 0x2fc   :  { %v5987_v9 = vadd.f32 %v2599_v4, %v2485_v51 }
 0x2fd   :  { %v2465_v29 = vpop.f32.mrf.mxu0  ;;  %v2607_v11 = vpop.f32.mrf.mxu1 }
 0x2fe   :  { %v2486_v63 = vadd.f32 %v2465_v29, %v2349_v62 }
 0x2ff   :  { %v4470_v58 = vpop.f32.mrf.mxu0  ;;  %v4501_v60 = vpop.f32.mrf.mxu1 }
 0x300   :  { %v5989_v61 = vadd.f32 %v2602_v3, %v2486_v63 }
 0x301   :  { %v2470_v14 = vpop.f32.mrf.mxu0  ;;  %v2609_v24 = vpop.f32.mrf.mxu1 }
 0x303   :  { %v4473_v18 = vpop.f32.mrf.mxu0  ;;  %v4502_v10 = vpop.f32.mrf.mxu1 }
 0x305   :  { %v2472_v1 = vpop.f32.mrf.mxu0  ;;  %v2613_v32 = vpop.f32.mrf.mxu1 }
 0x307   :  { %v4474_v28 = vpop.f32.mrf.mxu0  ;;  %v4505_v34 = vpop.f32.mrf.mxu1 }
 0x309   :  { %v2476_v27 = vpop.f32.mrf.mxu0  ;;  %v2615_v40 = vpop.f32.mrf.mxu1 }
 0x30b   :  { %v4477_v20 = vpop.f32.mrf.mxu0  ;;  %v4506_v50 = vpop.f32.mrf.mxu1 }
 0x30d   :  { %v2478_v6 = vpop.f32.mrf.mxu0  ;;  %v2857_v47 = vpop.f32.mrf.mxu1 }
 0x30f   :  { %v4478_v19 = vpop.f32.mrf.mxu0  ;;  %v4545_v62 = vpop.f32.mrf.mxu1 }
 0x311   :  { %v2720_v16 = vpop.f32.mrf.mxu0  ;;  %v2860_v36 = vpop.f32.mrf.mxu1 }
 0x312   :  { %v2755_v52 = vadd.f32 %v2720_v16, %v5979_v31 }
 0x313   :  { %v4517_v15 = vpop.f32.mrf.mxu0  ;;  %v4546_v30 = vpop.f32.mrf.mxu1 }
 0x314   :  { %v2892_v3 = vadd.f32 %v2857_v47, %v2755_v52 }
 0x315   :  { %v2723_v8 = vpop.f32.mrf.mxu0  ;;  %v2865_v56 = vpop.f32.mrf.mxu1 }
 0x316   :  { %v2756_v59 = vadd.f32 %v2723_v8, %v5981_v25 }
 0x317   :  { %v4518_v53 = vpop.f32.mrf.mxu0  ;;  %v4549_v33 = vpop.f32.mrf.mxu1 }
 0x318   :  { %v2893_v11 = vadd.f32 %v2860_v36, %v2756_v59 }
 0x319   :  { %v2728_v57 = vpop.f32.mrf.mxu0  ;;  %v2868_v37 = vpop.f32.mrf.mxu1 }
 0x31a   :  { %v2757_v29 = vadd.f32 %v2728_v57, %v5983_v12 }
 0x31b   :  { %v4521_v21 = vpop.f32.mrf.mxu0  ;;  %v4550_v0 = vpop.f32.mrf.mxu1 }
 0x31c   :  { %v2894_v31 = vadd.f32 %v2865_v56, %v2757_v29  ;;  %v3120_v0 = vlaneseq }
 0x31d   :  { %v2731_v54 = vpop.f32.mrf.mxu0  ;;  %v2873_v55 = vpop.f32.mrf.mxu1 }
 0x31e   :  { %v2758_v14 = vadd.f32 %v2731_v54, %v5985_v46 }
 0x31f   :  { %v4522_v7 = vpop.f32.mrf.mxu0  ;;  %v4553_v23 = vpop.f32.mrf.mxu1 }
 0x320   :  { %v2895_v1 = vadd.f32 %v2868_v37, %v2758_v14  ;;  %v4806_v37 = vmov 1983009808   ;;  %v4748_v7 = vld [vmem:[%s6141_s5 + $0x78] sm:$0xff]   ;;  %v6010_v23 = vld [vmem:[%s6140_s4] ss:$0 sm:$0xff]  ;;  %s4814_s4 = smov 52  }
 0x321   :  { %v2736_v22 = vpop.f32.mrf.mxu0  ;;  %v2876_v48 = vpop.f32.mrf.mxu1  ;;  %v3118_v21 = vunpack.c.l.s4 %v4806_v37  ;;  %4147 = vmatprep.subr.bf16.mxu1 %v4748_v7  ;;  %v4760_v37 = vld [vmem:[%s6141_s5 + $0x48] sm:$0xff]  }
 0x322   :  { %v2759_v25 = vadd.f32 %v2736_v22, %v5987_v9 }
 0x323   :  { %v4525_v45 = vpop.f32.mrf.mxu0  ;;  %v4554_v38 = vpop.f32.mrf.mxu1  ;;  %v3119_v54 = vunpack.c.0.s8 %v3118_v21 }
 0x324   :  { %v2896_v27 = vadd.f32 %v2873_v55, %v2759_v25  ;;  %v3121_v55 = vshrl.u32 %v3120_v0, 7  ;;  %v4749_v45 = vld [vmem:[%s6141_s5 + $0x38] sm:$0xff]  }
 0x325   :  { %v2739_v39 = vpop.f32.mrf.mxu0  ;;  %4148 = vmatpush3.bf16.msra.mxu1 %v4749_v45 }
 0x326   :  { %v2760_v34 = vadd.f32 %v2739_v39, %v5989_v61  ;;  %v6016_v39 = vsub.s32 %v3119_v54, %v3121_v55  ;;  %v4761_v54 = vld [vmem:[%s6141_s5 + $0x8] sm:$0xff]   ;;  %v4762_v55 = vld [vmem:[%s6141_s5 + $0x40] sm:$0xff]  }
 0x327   :  { %v4526_v26 = vpop.f32.mrf.mxu0 }
 0x328   :  { %v2897_v46 = vadd.f32 %v2876_v48, %v2760_v34 }
 0x329   :  { %v2744_v43 = vpop.f32.mrf.mxu0 }
 0x32b   :  { %v4529_v17 = vpop.f32.mrf.mxu0 }
 0x32d   :  { %v2746_v44 = vpop.f32.mrf.mxu0 }
 0x32e   :  { %v4750_v44 = vld [vmem:[%s6141_s5 + $0x70] sm:$0xff]  }
 0x32f   :  { %v4530_v41 = vpop.f32.mrf.mxu0  ;;  %4149 = vmatprep.subr.bf16.mxu1 %v4750_v44 }
 0x330   :  { %v4751_v41 = vld [vmem:[%s6141_s5 + $0x30] sm:$0xff]  }
 0x331   :  { %v2750_v13 = vpop.f32.mrf.mxu0  ;;  %4150 = vmatpush3.bf16.msra.mxu1 %v4751_v41 }
 0x333   :  { %v4533_v4 = vpop.f32.mrf.mxu0 }
 0x335   :  { %v2752_v35 = vpop.f32.mrf.mxu0 }
 0x337   :  { %v4534_v2 = vpop.f32.mrf.mxu0 }
 0x339   :  { %v2994_v51 = vpop.f32.mrf.mxu0 }
 0x33a   :  { %v3029_v42 = vadd.f32 %v2994_v51, %v2892_v3 }
 0x33b   :  { %v4573_v5 = vpop.f32.mrf.mxu0 }
 0x33c   :  { %3041 = vrot.lane.b32.xlu1 %v3029_v42, %s4804_s3 }
 0x33d   :  { %v2997_v63 = vpop.f32.mrf.mxu0 }
 0x33e   :  { %v3030_v58 = vadd.f32 %v2997_v63, %v2893_v11  ;;  %v4753_v63 = vld [vmem:[%s6141_s5 + $0x28] sm:$0xff]  }
 0x33f   :  { %v4574_v60 = vpop.f32.mrf.mxu0 }
 0x340   :  { %3043 = vrot.lane.b32.xlu0 %v3030_v58, %s4804_s3 }
 0x341   :  { %v3002_v24 = vpop.f32.mrf.mxu0 }
 0x342   :  { %v3031_v18 = vadd.f32 %v3002_v24, %v2894_v31 }
 0x343   :  { %v4577_v10 = vpop.f32.mrf.mxu0 }
 0x344   :  { %3045 = vrot.lane.b32.xlu1 %v3031_v18, %s4804_s3 }
 0x345   :  { %v3005_v32 = vpop.f32.mrf.mxu0 }
 0x346   :  { %v3032_v28 = vadd.f32 %v3005_v32, %v2895_v1  ;;  %v4754_v32 = vld [vmem:[%s6141_s5 + $0x60] sm:$0xff]  }
 0x347   :  { %v4578_v12 = vpop.f32.mrf.mxu0 }
 0x348   :  { %3047 = vrot.lane.b32.xlu0 %v3032_v28, %s4804_s3  ;;  %v2767_v12 = vld [vmem:[#allocation2 + $0x4a] sm:$0xff] }
 0x349   :  { %v3010_v40 = vpop.f32.mrf.mxu0 }
 0x34a   :  { %v3033_v20 = vadd.f32 %v3010_v40, %v2896_v27  ;;  %v2768_v40 = vld [vmem:[#allocation2 + $0x52] sm:$0xff] }
 0x34b   :  { %v4581_v50 = vpop.f32.mrf.mxu0 }
 0x34c   :  { %3049 = vrot.lane.b32.xlu1 %v3033_v20, %s4804_s3  ;;  %v2773_v50 = vpack.c.bf16 %v2768_v40, %v2767_v12 }
 0x34d   :  { %v3013_v6 = vpop.f32.mrf.mxu0 }
 0x34e   :  { %v3034_v47 = vadd.f32 %v3013_v6, %v2897_v46  ;;  %v4756_v46 = vld [vmem:[%s6141_s5 + $0x58] sm:$0xff]   ;;  %4556 = vmatmul.mubr.msk.bf16.gmra.mxu1 %vm1883_vm6, %v2773_v50 }
 0x34f   :  { %v4582_v19 = vpop.f32.mrf.mxu0  ;;  %4559 = vmatprep.mubr.msk.bf16.mxu1 %vm4803_vm2, %v6198_v49 }
 0x350   :  { %3051 = vrot.lane.b32.xlu0 %v3034_v47, %s4804_s3 }
 0x3ae   :  { %v3042_v62 = vpop.permute.xlu1 %3041 }
 0x3af   :  { %v3059_v9 = vmax.f32 %v3029_v42, %v3042_v62  ;;  %v4752_v42 = vld [vmem:[%s6141_s5 + $0x68] sm:$0xff]  }
 0x3b0   :  { %4151 = vmatprep.subr.bf16.mxu1 %v4752_v42 }
 0x3b1   :  { %3071 = vrot.lane.b32.xlu1 %v3059_v9, %s4805_s29  ;;  %4152 = vmatpush3.bf16.msra.mxu1 %v4753_v63 }
 0x3b2   :  { %v3044_v16 = vpop.permute.xlu0 %3043  ;;  %4153 = vmatprep.subr.bf16.mxu1 %v4754_v32  ;;  %v4768_v32 = vld [vmem:[%s6141_s5 + $0x80] sm:$0xff]  }
 0x3b3   :  { %v3060_v36 = vmax.f32 %v3030_v58, %v3044_v16 }
 0x3b5   :  { %3073 = vrot.lane.b32.xlu0 %v3060_v36, %s4805_s29 }
 0x3b6   :  { %v3046_v15 = vpop.permute.xlu1 %3045 }
 0x3b7   :  { %v3061_v61 = vmax.f32 %v3031_v18, %v3046_v15 }
 0x3b9   :  { %3075 = vrot.lane.b32.xlu1 %v3061_v61, %s4805_s29 }
 0x3ba   :  { %v3048_v30 = vpop.permute.xlu0 %3047 }
 0x3bb   :  { %v3062_v8 = vmax.f32 %v3032_v28, %v3048_v30  ;;  %v4755_v28 = vld [vmem:[%s6141_s5 + $0x20] sm:$0xff]   ;;  %v4758_v30 = vld [vmem:[%s6141_s5 + $0x50] sm:$0xff]  }
 0x3bc   :  { %4154 = vmatpush3.bf16.msra.mxu1 %v4755_v28 }
 0x3bd   :  { %3077 = vrot.lane.b32.xlu0 %v3062_v8, %s4805_s29  ;;  %4155 = vmatprep.subr.bf16.mxu1 %v4756_v46 }
 0x3be   :  { %v3050_v56 = vpop.permute.xlu1 %3049 }
 0x3bf   :  { %v5997_v53 = vmax.f32 %v3033_v20, %v3050_v56  ;;  %v2769_v56 = vld [vmem:[#allocation2 + $0x5a] sm:$0xff] }
 0x3c1   :  { %3079 = vrot.lane.b32.xlu1 %v5997_v53, %s4805_s29 }
 0x3c2   :  { %v3052_v33 = vpop.permute.xlu0 %3051 }
 0x3c3   :  { %v6000_v57 = vmax.f32 %v3034_v47, %v3052_v33 }
 0x3c5   :  { %3081 = vrot.lane.b32.xlu0 %v6000_v57, %s4805_s29 }
 0x423   :  { %v3072_v22 = vpop.permute.xlu1 %3071 }
 0x424   :  { %v3089_v48 = vmax.f32 %v3059_v9, %v3072_v22  ;;  %v4757_v9 = vld [vmem:[%s6141_s5 + $0x18] sm:$0xff]  }
 0x425   :  { %4156 = vmatpush3.bf16.msra.mxu1 %v4757_v9  ;;  %v4772_v9 = vld [vmem:[%s6143_s7] sm:$0xff]  }
 0x426   :  { %v3102_v38 = vadd.f32 %v6010_v23, %v3089_v48  ;;  %4157 = vmatprep.subr.bf16.mxu1 %v4758_v30  ;;  %v4763_v48 = vld [vmem:[%s6141_s5] sm:$0xff]  }
 0x427   :  { %v3074_v26 = vpop.permute.xlu0 %3073 }
 0x428   :  { %v3108_v43 = vmax.f32 %v3102_v38, 0.0  ;;  %v3090_v17 = vmax.f32 %v3060_v36, %v3074_v26 }
 0x42a   :  { %v3103_v13 = vadd.f32 %v6010_v23, %v3090_v17  ;;  %v3123_v4 = vrot.slane %v3108_v43, %v6016_v39  ;;  %v3130_v52 = vcombine.high %v3108_v43, %v3108_v43  ;;  %3115 = vst.msk [vmem:[#allocation3] sm:$0x3] %vm3114_vm7, %v3108_v43  ;;  %vm3246_vm7 = vcmask 1042304  }
 0x42b   :  { %v3076_v35 = vpop.permute.xlu1 %3075 }
 0x42c   :  { %v3109_v2 = vmax.f32 %v3103_v13, 0.0  ;;  %v3091_v59 = vmax.f32 %v3061_v61, %v3076_v35  ;;  %v3124_v3 = vcombine.high %v3123_v4, %v3123_v4  ;;  %v3137_v51 = vrot.slane %v3130_v52, %v6016_v39 }
 0x42e   :  { %v3150_v5 = vcombine.high %v3109_v2, %v3109_v2  ;;  %v3104_v29 = vadd.f32 %v6010_v23, %v3091_v59  ;;  %3125 = vrot.lane.b32.xlu1 %v3124_v3, %s4807_s20  ;;  %3138 = vrot.lane.b32.xlu0 %v3137_v51, %s4808_s21  ;;  %v3143_v14 = vcombine.high %v3137_v51, %v3137_v51 }
 0x42f   :  { %v3078_v11 = vpop.permute.xlu0 %3077 }
 0x430   :  { %v3110_v58 = vmax.f32 %v3104_v29, 0.0  ;;  %v3092_v60 = vmax.f32 %v3062_v8, %v3078_v11  ;;  %v3157_v18 = vrot.slane %v3150_v5, %v6016_v39  ;;  %v4759_v8 = vld [vmem:[%s6141_s5 + $0x10] sm:$0xff]  }
 0x431   :  { %4158 = vmatpush3.bf16.msra.mxu1 %v4759_v8  ;;  %v3958_v8 = vld [vmem:[%s6142_s6] ss:$0 sm:$0xff] }
 0x432   :  { %v3105_v31 = vadd.f32 %v6010_v23, %v3092_v60  ;;  %3144 = vrot.lane.b32.xlu1 %v3143_v14, %s4809_s0  ;;  %v3176_v24 = vrot.slane %v3110_v58, %v6016_v39  ;;  %v3163_v27 = vcombine.high %v3157_v18, %v3157_v18  ;;  %4159 = vmatprep.subr.bf16.mxu1 %v4760_v37  ;;  %s4817_s0 = smov 92  }
 0x433   :  { %v3080_v10 = vpop.permute.xlu1 %3079 }
 0x434   :  { %v3111_v25 = vmax.f32 %v3105_v31, 0.0  ;;  %v3093_v1 = vmax.f32 %v5997_v53, %v3080_v10  ;;  %3177 = vrot.lane.b32.xlu0 %v3176_v24, %s4810_s24  ;;  %v3187_v19 = vcombine.high %v3176_v24, %v3176_v24  ;;  %v4765_v24 = vld [vmem:[%s6141_s5 + $0x98] sm:$0xff]   ;;  %v4766_v10 = vld [vmem:[%s6141_s5 + $0x90] sm:$0xff]  }
 0x435   :  { %4160 = vmatpush3.bf16.msra.mxu1 %v4761_v54 }
 0x436   :  { %v3106_v34 = vadd.f32 %v6010_v23, %v3093_v1  ;;  %3158 = vrot.lane.b32.xlu1 %v3157_v18, %s4811_s28  ;;  %v3200_v62 = vrot.slane %v3111_v25, %v6016_v39  ;;  %v3212_v16 = vcombine.high %v3111_v25, %v3111_v25  ;;  %4161 = vmatprep.subr.bf16.mxu1 %v4762_v55  ;;  %v4767_v25 = vld [vmem:[%s6141_s5 + $0x88] sm:$0xff]  }
 0x437   :  { %v3082_v20 = vpop.permute.xlu0 %3081 }
 0x438   :  { %v3112_v6 = vmax.f32 %v3106_v34, 0.0  ;;  %v3094_v47 = vmax.f32 %v6000_v57, %v3082_v20  ;;  %3164 = vrot.lane.b32.xlu0 %v3163_v27, %s4812_s30  ;;  %v3206_v61 = vcombine.high %v3200_v62, %v3200_v62  ;;  %v3219_v33 = vrot.slane %v3212_v16, %v6016_v39  ;;  %v2881_v34 = vpop.f32.mrf.mxu1 }
 0x439   :  { %v2774_v57 = vpack.c.bf16 %v2769_v56, %v2769_v56  ;;  %4162 = vmatpush3.bf16.msra.mxu1 %v4763_v48  ;;  %v2906_v48 = vld [vmem:[#allocation2 + $0x5c] sm:$0xff] }
 0x43a   :  { %v3232_v36 = vcombine.high %v3112_v6, %v3112_v6  ;;  %3188 = vrot.lane.b32.xlu1 %v3187_v19, %s4813_s13  ;;  %v3107_v15 = vadd.f32 %v6010_v23, %v3094_v47  ;;  %v3225_v7 = vcombine.high %v3219_v33, %v3219_v33  ;;  %4591 = vmatprep.subr.bf16.mxu1 %v6198_v49  ;;  %v4557_v27 = vpop.f32.mrf.mxu1  ;;  %v4770_v19 = vld [vmem:[%s6143_s7 + $0x10] sm:$0xff]  }
 0x43b   :  { %4560 = vmatmul.mubr.msk.bf16.gmra.mxu1 %vm1883_vm6, %v2774_v57 }
 0x43c   :  { %3201 = vrot.lane.b32.xlu0 %v3200_v62, %s4801_s12  ;;  %v3239_v53 = vrot.slane %v3232_v36, %v6016_v39  ;;  %v3113_v21 = vmax.f32 %v3107_v15, 0.0  ;;  %v2883_v40 = vpop.f32.mrf.mxu1  ;;  %v4771_v62 = vld [vmem:[%s6143_s7 + $0x8] sm:$0xff]  }
 0x43e   :  { %3207 = vrot.lane.b32.xlu1 %v3206_v61, %s4814_s4  ;;  %v3250_v23 = vcombine.high %v3239_v53, %v3239_v53  ;;  %v3263_v22 = vrot.slane %v3113_v21, %v6016_v39  ;;  %v4558_v20 = vpop.f32.mrf.mxu1 }
 0x440   :  { %3240 = vrot.lane.b32.xlu0 %v3239_v53, %s4815_s18  ;;  %v3269_v45 = vcombine.high %v3263_v22, %v3263_v22 }
 0x442   :  { %3220 = vrot.lane.b32.xlu1 %v3219_v33, %s4816_s23 }
 0x444   :  { %3226 = vrot.lane.b32.xlu0 %v3225_v7, %s4817_s0  ;;  %v2904_v7 = vld [vmem:[#allocation2 + $0x4c] sm:$0xff] }
 0x446   :  { %3251 = vrot.lane.b32.xlu1 %v3250_v23, %s4818_s26  ;;  %v2905_v23 = vld [vmem:[#allocation2 + $0x54] sm:$0xff] }
 0x448   :  { %3264 = vrot.lane.b32.xlu0 %v3263_v22, %s4819_s2  ;;  %v2910_v22 = vpack.c.bf16 %v2905_v23, %v2904_v7 }
 0x44a   :  { %3270 = vrot.lane.b32.xlu1 %v3269_v45, %s4820_s27  ;;  %4584 = vmatmul.mubr.msk.bf16.gmra.mxu0 %vm1883_vm6, %v2910_v22  ;;  %v2911_v45 = vpack.c.bf16 %v2906_v48, %v2906_v48 }
 0x44b   :  { %4587 = vmatprep.mubr.msk.bf16.mxu0 %vm4803_vm2, %v6198_v49 }
 0x452   :  { %4588 = vmatmul.mubr.msk.bf16.gmra.mxu0 %vm1883_vm6, %v2911_v45 }
 0x4a0   :  { %v3126_v38 = vpop.permute.xlu1 %3125  ;;  %v3139_v26 = vpop.permute.xlu0 %3138 }
 0x4a1   :  { %3129 = vst.msk [vmem:[#allocation3] sm:$0x3] %vm3128_vm8, %v3126_v38  ;;  %vm3247_vm8 = vcmask 27650   ;;  %v3634_v38 = vand.u32 127, %v3120_v0 }
 0x4a2   :  { %3142 = vst.msk [vmem:[#allocation3] sm:$0x3] %vm3141_vm9, %v3139_v26  ;;  %vm3243_vm9 = vcmask 916480   ;;  %v3980_v26 = vld [vmem:[%s6144_s8] ss:$0 sm:$0xff]  ;;  %s4821_s8 = smov [#allocation4]  }
 0x4a3   :  { %s3657_s21 = sshll.u32 %s4821_s8, 4  ;;  %s3658_s21 = int_to_ptr.vmem [resolvable:$true] %s3657_s21 }
 0x4a4   :  { %v3145_v43 = vpop.permute.xlu1 %3144  ;;  %s4777_s22 = scalar_lea.vmem %s3658_s21, 32  ;;  %p4782_p1 = scmp.lt.s32.totalorder %s3658_s21, %s3658_s21 }
 0x4a5   :  { %3148 = vst.msk [vmem:[#allocation3] sm:$0x3] %vm3147_vm10, %v3145_v43  ;;  %vm3229_vm10 = vcmask 911072   ;;  %p4778_p0 = scmp.ne.s32.totalorder %s3658_s21, %s4777_s22  ;;  %p4783_p2 = scmp.lt.s32.totalorder %s4777_s22, %s4777_s22 }
 0x4a6   :  { %v3178_v17 = vpop.permute.xlu0 %3177 }
 0x4a7   :  { %v3179_v44 = vrot.slane %v3178_v17, 6  ;;  %p4784_p3 = por %p4783_p2, %p4782_p1 }
 0x4a8   :  { %v3159_v41 = vpop.permute.xlu1 %3158 }
 0x4a9   :  { %3162 = vst.msk [vmem:[#allocation3] sm:$0x3] %vm3161_vm11, %v3159_v41  ;;  %v3181_v4 = vsel %vm3180_vm14, %v3179_v44, %v3178_v17  ;;  %vm3248_vm11 = vmor %vm3247_vm8, %vm3246_vm7  ;;  %vm3273_vm14 = vcmask 517472   ;;  %p4785_p4 = pnand %p4784_p3, %p4778_p0 }
 0x4aa   :  { %v3165_v13 = vpop.permute.xlu0 %3164 }
 0x4ab   :  { %3168 = vst.msk [vmem:[#allocation3] sm:$0x3] %vm3167_vm15, %v3165_v13  ;;  %vm3635_vm15 = vcmp.lt.s32.totalorder %v3634_v38, 10 }
 0x4ac   :  { %v3189_v52 = vpop.permute.xlu1 %3188  ;;  %3186 = vst.msk [vmem:[#allocation3] sm:$0xf] %vm3185_vm0, %v3181_v4  ;;  %vm3637_vm0 = vcmask 1041408  }
 0x4ad   :  { %3192 = vst.msk [vmem:[#allocation3 + $0x2] sm:$0x3] %vm3191_vm1, %v3189_v52 }
 0x4ae   :  { %v3202_v35 = vpop.permute.xlu0 %3201 }
 0x4af   :  { %3205 = vst.msk [vmem:[#allocation3 + $0x2] sm:$0x3] %vm3204_vm3, %v3202_v35 }
 0x4b0   :  { %v3208_v2 = vpop.permute.xlu1 %3207 }
 0x4b1   :  { %3211 = vst.msk [vmem:[#allocation3 + $0x2] sm:$0x3] %vm3210_vm4, %v3208_v2 }
 0x4b2   :  { %v3241_v59 = vpop.permute.xlu0 %3240 }
 0x4b3   :  { %v3242_v3 = vrot.slane %v3241_v59, 6 }
 0x4b4   :  { %v3221_v51 = vpop.permute.xlu1 %3220 }
 0x4b5   :  { %3224 = vst.msk [vmem:[#allocation3 + $0x2] sm:$0x3] %vm3223_vm5, %v3221_v51  ;;  %v3244_v5 = vsel %vm3243_vm9, %v3242_v3, %v3241_v59 }
 0x4b6   :  { %v3227_v42 = vpop.permute.xlu0 %3226 }
 0x4b7   :  { %3230 = vst.msk [vmem:[#allocation3 + $0x2] sm:$0x3] %vm3229_vm10, %v3227_v42 }
 0x4b8   :  { %v3252_v29 = vpop.permute.xlu1 %3251  ;;  %3249 = vst.msk [vmem:[#allocation3 + $0x2] sm:$0xf] %vm3248_vm11, %v3244_v5 }
 0x4b9   :  { %3255 = vst.msk [vmem:[#allocation3 + $0x4] sm:$0x3] %vm3254_vm12, %v3252_v29 }
 0x4ba   :  { %v3265_v11 = vpop.permute.xlu0 %3264 }
 0x4bb   :  { %3268 = vst.msk [vmem:[#allocation3 + $0x4] sm:$0x3] %vm3267_vm13, %v3265_v11 }
 0x4bc   :  { %v3271_v63 = vpop.permute.xlu1 %3270 }
 0x4bd   :  { %3274 = vst.msk [vmem:[#allocation3 + $0x4] sm:$0x3] %vm3273_vm14, %v3271_v63 }
 0x4c4   :  { %v3275_v58 = vld [vmem:[#allocation3] sm:$0x3f] }
 0x4c5   :  { %v3284_v60 = vrot.slane %v3275_v58, %v6016_v39  ;;  %v3277_v1 = vcombine.high %v3275_v58, %v3275_v58 }
 0x4c7   :  { %v3292_v14 = vcombine.high %v3284_v60, %v3284_v60  ;;  %v3296_v18 = vpack.c.bf16 %v3284_v60, %v3284_v60  ;;  %v3291_v28 = vrot.slane %v3277_v1, %v6016_v39  ;;  %v4769_v39 = vld [vmem:[%s6143_s7 + $0x18] sm:$0xff]  }
 0x4c9   :  { %v3297_v31 = vpack.c.bf16 %v3292_v14, %v3292_v14  ;;  %v3298_v12 = vpack.c.bf16 %v3291_v28, %v3291_v28 }
 0x4cb   :  { %3501 = vmatprep.mubr.bf16.mxu1 %v3297_v31 }
 0x4cc   :  { %3502 = vmatmul.mubr.bf16.vlgmr.msra.gmra.mxu1 %v3296_v18 }
 0x4cd   :  { %4592 = vmatpush3.bf16.msra.mxu1 %v4765_v24  ;;  %4599 = vmatprep.mubr.msk.bf16.mxu1 %vm4803_vm2, %v6198_v49 }
 0x4ce   :  { %4593 = vmatprep.subr.bf16.mxu1 %v6198_v49 }
 0x4d1   :  { %4594 = vmatpush3.bf16.msra.mxu1 %v4766_v10 }
 0x4d2   :  { %4595 = vmatprep.subr.bf16.mxu1 %v6198_v49 }
 0x4d5   :  { %4596 = vmatpush3.bf16.msra.mxu1 %v4767_v25 }
 0x4d6   :  { %4597 = vmatprep.subr.bf16.mxu1 %v6198_v49 }
 0x4d9   :  { %4598 = vmatpush3.bf16.msra.mxu1 %v4768_v32 }
 0x4da   :  { %4603 = vmatprep.subr.bf16.mxu1 %v6198_v49 }
 0x4dc   :  { %4600 = vmatmul.mubr.msk.bf16.vlgmr.msra.gmra.mxu1 %vm1883_vm6, %v3298_v12 }
 0x4dd   :  { %4611 = vmatprep.mubr.msk.bf16.mxu1 %vm4803_vm2, %v6198_v49  ;;  %4604 = vmatpush3.bf16.msra.mxu1 %v4769_v39 }
 0x4de   :  { %4605 = vmatprep.subr.bf16.mxu1 %v6198_v49 }
 0x4e1   :  { %4606 = vmatpush3.bf16.msra.mxu1 %v4770_v19 }
 0x4e2   :  { %4607 = vmatprep.subr.bf16.mxu1 %v6198_v49 }
 0x4e5   :  { %4608 = vmatpush3.bf16.msra.mxu1 %v4771_v62 }
 0x4e6   :  { %4609 = vmatprep.subr.bf16.mxu1 %v6198_v49 }
 0x4e9   :  { %4610 = vmatpush3.bf16.msra.mxu1 %v4772_v9 }
 0x4fb   :  { %v2887_v50 = vpop.f32.mrf.mxu1 }
 0x4fd   :  { %v4561_v46 = vpop.f32.mrf.mxu1 }
 0x4ff   :  { %v2889_v6 = vpop.f32.mrf.mxu1 }
 0x501   :  { %v4562_v47 = vpop.f32.mrf.mxu1 }
 0x50a   :  { %v3018_v52 = vpop.f32.mrf.mxu0 }
 0x50c   :  { %v4585_v35 = vpop.f32.mrf.mxu0 }
 0x50e   :  { %v3020_v2 = vpop.f32.mrf.mxu0 }
 0x510   :  { %v4586_v59 = vpop.f32.mrf.mxu0 }
 0x512   :  { %v3024_v0 = vpop.f32.mrf.mxu0 }
 0x514   :  { %v4589_v3 = vpop.f32.mrf.mxu0 }
 0x516   :  { %v3026_v51 = vpop.f32.mrf.mxu0 }
 0x518   :  { %v4590_v42 = vpop.f32.mrf.mxu0 }
 0x58c   :  { %v4163_v16 = vpop.f32.mrf.mxu1 }
 0x58e   :  { %v4164_v36 = vpop.f32.mrf.mxu1 }
 0x58f   :  { %v4165_v30 = vadd.f32 %v4164_v36, %v4163_v16 }
 0x590   :  { %v4166_v15 = vpop.f32.mrf.mxu1 }
 0x591   :  { %v3504_v56 = vadd.f32 %v4165_v30, %v3958_v8 }
 0x592   :  { %v4167_v61 = vpop.f32.mrf.mxu1 }
 0x59c   :  { %v3543_v53 = vpop.f32.mrf.mxu1 }
 0x59d   :  { %v3544_v33 = vadd.f32 %v3543_v53, %v3504_v56 }
 0x59e   :  { %v4601_v57 = vpop.f32.mrf.mxu1 }
 0x59f   :  { %v3549_v37 = vmax.f32 %v3544_v33, 0.0 }
 0x5a0   :  { %v3546_v21 = vpop.f32.mrf.mxu1 }
 0x5a1   :  { %v3550_v54 = vpack.c.bf16 %v3549_v37, %v3549_v37 }
 0x5a2   :  { %v4602_v55 = vpop.f32.mrf.mxu1 }
 0x5a3   :  { %4612 = vmatmul.mubr.msk.bf16.vlgmr.msra.gmra.mxu1 %vm1883_vm6, %v3550_v54 }
 0x663   :  { %v3627_v43 = vpop.f32.mrf.mxu1 }
 0x664   :  { %v3628_v17 = vadd.f32 %v3980_v26, %v3627_v43 }
 0x665   :  { %v4613_v44 = vpop.f32.mrf.mxu1 }
 0x666   :  { %v3636_v41 = vsel %vm3635_vm15, %v3628_v17, -inf }
 0x667   :  { %v3630_v13 = vpop.f32.mrf.mxu1  ;;  %v3638_v4 = vsel %vm3637_vm0, %v3636_v41, -inf }
 0x668   :  { %3639 = vmax.xlane.f32.xlu0 %v3638_v4 }
 0x669   :  { %v4614_v49 = vpop.f32.mrf.mxu1 }
 0x6f1   :  { %v3640_v5 = vpop.xlane.xlu0 %3639 }
 0x6f2   :  { %v3641_v29 = vsub.f32 %v3636_v41, %v3640_v5 }
 0x6f4   :  { %v3642_v11 = vmul.f32 1.442695, %v3641_v29 }
 0x6f6   :  { %4773 = vpow2.f32 %v3642_v11 }
 0x703   :  { %v4774_v63 = vpop.eup %4773 }
 0x704   :  { %v3644_v58 = vsel %vm3637_vm0, %v4774_v63, 0.0 }
 0x705   :  { %3645 = vadd.xlane.f32.xlu1 %v3644_v58 }
 0x78e   :  { %v3646_v60 = vpop.xlane.xlu1 %3645 }
 0x78f   :  { %4775 = vlog2.f32 %v3646_v60 }
 0x79c   :  { %v4776_v14 = vpop.eup %4775 }
 0x79d   :  { %v3648_v31 = vmul.f32 0.6931472, %v4776_v14 }
 0x79f   :  { %v3649_v24 = vsub.f32 %v3641_v29, %v3648_v31 }
 0x7a1   :  { %3650 = vst [vmem:[#allocation4] sm:$0x3] %v3649_v24 }
 0x7a2   :  { %4788 = shalt.err (!%p4785_p4)
}
 0x7a3   :  { %3660 = dma.vmem_to_hbm [thread:$0]  %s3658_s21, 32, %s6145_s9, [#allocation5]  }
 0x7a4   :  { %4797 = dma.done.wait [#allocation5], 32  }
 0x7a5   :  { %4798 = vsyncadd [#allocation5], 4294967264 }
 0x7a6   :  { %3664 = vsyncpa [#allocation5], 1 }

</bundles_post_ra>
